<compile_context>
chip_gen: v7x
topology: tpu7x:2x2x1
jax: 0.10.0
libtpu: 0.0.40
codegen_flags: <defaults>
</compile_context>

<pallas_src>
import functools

import jax
import jax.numpy as jnp
from jax import lax
from jax.experimental import pallas as pl
from jax.experimental.pallas import tpu as pltpu

_LN_EPS = 1e-5


def _linear_ln_lrelu(x_bf16, w_bf16, b, g, be):
    """Fused Linear -> LayerNorm(eps=1e-5) -> LeakyReLU(0.1).

    Matmul operands are bf16 (f32 accumulation); all LN / element-wise math is
    f32.  Row moments go through the MXU in a single fused push.
    """
    h = jnp.dot(x_bf16, w_bf16, preferred_element_type=jnp.float32) + b   # (tb, n)
    n = h.shape[-1]

    # Fused moments: [sum(h), sum(h*h)] via one (tb, 2n) x (2n, 2) MXU push.
    hh = jnp.concatenate([h, h * h], axis=-1)                             # (tb, 2n)
    ones_blk = jnp.concatenate(
        [jnp.concatenate([jnp.ones((n, 1), jnp.float32),
                          jnp.zeros((n, 1), jnp.float32)], axis=1),
         jnp.concatenate([jnp.zeros((n, 1), jnp.float32),
                          jnp.ones((n, 1), jnp.float32)], axis=1)],
        axis=0)                                                           # (2n, 2)
    s12 = jnp.dot(hh, ones_blk, preferred_element_type=jnp.float32,
                  precision=lax.Precision.HIGHEST)                        # (tb, 2)

    inv_n = 1.0 / n
    mu = s12[:, 0:1] * inv_n
    var = jnp.maximum(s12[:, 1:2] * inv_n - mu * mu, 0.0)  # biased var (torch LN)
    hn = (h - mu) * lax.rsqrt(var + _LN_EPS)
    hn = hn * g + be
    return jnp.maximum(hn, 0.1 * hn)                        # LeakyReLU(0.1)


def _connect_policy_kernel(x_ref, w1_ref, w2_ref, w3_ref, vecs_ref,
                           wh_ref, bh_ref, head_ref, feat_ref, *, action_dim):
    x = x_ref[...]  # bf16 directly from HBM (no f32 round trip)

    # vecs rows: [b1, g1, be1, b2, g2, be2, b3, g3, be3]
    h = _linear_ln_lrelu(x, w1_ref[...],
                         vecs_ref[0:1, :], vecs_ref[1:2, :], vecs_ref[2:3, :])
    h = _linear_ln_lrelu(h.astype(jnp.bfloat16), w2_ref[...],
                         vecs_ref[3:4, :], vecs_ref[4:5, :], vecs_ref[5:6, :])
    h = _linear_ln_lrelu(h.astype(jnp.bfloat16), w3_ref[...],
                         vecs_ref[6:7, :], vecs_ref[7:8, :], vecs_ref[8:9, :])

    feat_ref[...] = h

    # Fused heads: columns [0, A) = mean head, [A, 2A) = log-std head, the
    # remaining lanes are zero padding.  One lane-dense (tb, 128) bf16 store.
    head = jnp.dot(h.astype(jnp.bfloat16), wh_ref[...],
                   preferred_element_type=jnp.float32) + bh_ref[...]
    lane = lax.broadcasted_iota(jnp.int32, head.shape, 1)
    is_mean = lane < action_dim
    # One shared exp:  sigmoid(x) = 1 / (1 + exp(-x))  (stable for both tails),
    # std lanes get exp(clamp(x, -20, 2)).
    t = jnp.where(is_mean, -head, jnp.clip(head, -20.0, 2.0))
    e = jnp.exp(t)
    out = jnp.where(is_mean, pl.reciprocal(1.0 + e, approx=True), e)
    head_ref[...] = out.astype(head_ref.dtype)


def prepare_params(params, action_dim):
    """One-time packing of parameters (run once, outside the forward path)."""
    hidden = params["w3"].shape[1]
    assert params["w1"].shape[1] == params["w2"].shape[1] == hidden, \
        "packed-vector layout assumes equal hidden dims"
    A = action_dim
    headw = 128 * pl.cdiv(2 * A, 128)       # lane-dense padded head width

    # Fused, zero-padded head weight / bias (mean cols [0,A), log-std [A,2A)).
    w_head = jnp.zeros((hidden, headw), jnp.float32)
    w_head = w_head.at[:, :A].set(params["wm"]).at[:, A:2 * A].set(params["ws"])
    b_head = jnp.zeros((1, headw), jnp.float32)
    b_head = b_head.at[0, :A].set(params["bm"]).at[0, A:2 * A].set(params["bs"])

    # Pack the nine per-layer 1-D vectors into a single (9, hidden) DMA.
    vecs = jnp.stack([params["b1"], params["g1"], params["be1"],
                      params["b2"], params["g2"], params["be2"],
                      params["b3"], params["g3"], params["be3"]], axis=0)

    return {
        "w1": params["w1"].astype(jnp.bfloat16),
        "w2": params["w2"].astype(jnp.bfloat16),
        "w3": params["w3"].astype(jnp.bfloat16),
        "vecs": vecs.astype(jnp.float32),
        "w_head": w_head.astype(jnp.bfloat16),
        "b_head": b_head,
    }


def _pick_tb(batch, block_b):
    """Batch tile: multiple of 16, capped so the grid has >=2 steps if possible."""
    if batch <= 16:
        return batch                              # single full-dim block
    tb = min(block_b, (batch // 16) * 16)
    if pl.cdiv(batch, tb) < 2:                    # guarantee >=2 grid steps (v7x 2 TCs)
        tb = max(16, ((batch // 2) // 16) * 16)
    return tb


@functools.partial(jax.jit, static_argnames=("action_dim", "block_b"))
def connect_policy_forward(x, prep, *, action_dim, block_b=512):
    """Jitted forward: one fused pallas_call, batch-tiled grid, resident weights."""
    B, input_dim = x.shape
    hidden = prep["w3"].shape[1]
    headw = prep["w_head"].shape[1]
    A = action_dim

    tb = _pick_tb(B, block_b)
    Bp = tb * pl.cdiv(B, tb)
    xb = x.astype(jnp.bfloat16)
    if Bp != B:
        xb = jnp.pad(xb, ((0, Bp - B), (0, 0)))   # masked tail via zero padding
    grid = (Bp // tb,)

    kernel = functools.partial(_connect_policy_kernel, action_dim=A)

    head_out, feat = pl.pallas_call(
        kernel,
        out_shape=(jax.ShapeDtypeStruct((Bp, headw), jnp.bfloat16),
                   jax.ShapeDtypeStruct((Bp, hidden), jnp.float32)),
        grid=grid,
        in_specs=[
            pl.BlockSpec((tb, input_dim), lambda i: (i, 0)),      # x (batch-tiled, bf16)
            pl.BlockSpec((input_dim, hidden), lambda i: (0, 0)),  # W1 (VMEM-resident)
            pl.BlockSpec((hidden, hidden), lambda i: (0, 0)),     # W2 (resident)
            pl.BlockSpec((hidden, hidden), lambda i: (0, 0)),     # W3 (resident)
            pl.BlockSpec((9, hidden), lambda i: (0, 0)),          # packed 1-D params
            pl.BlockSpec((hidden, headw), lambda i: (0, 0)),      # fused head weight
            pl.BlockSpec((1, headw), lambda i: (0, 0)),           # fused head bias
        ],
        out_specs=(
            pl.BlockSpec((tb, headw), lambda i: (i, 0)),          # packed heads (bf16)
            pl.BlockSpec((tb, hidden), lambda i: (i, 0)),         # features (f32)
        ),
        compiler_params=pltpu.CompilerParams(
            dimension_semantics=("parallel",)),
    )(xb, prep["w1"], prep["w2"], prep["w3"], prep["vecs"],
      prep["w_head"], prep["b_head"])

    # Under jit these slices/casts fuse with the consumer (no extra HBM pass).
    mean = head_out[:B, :A].astype(jnp.float32)
    std = head_out[:B, A:2 * A].astype(jnp.float32)
    return mean, std, feat[:B]


def init_params(key, input_dim, hidden_dims, action_dim):
    """Deterministic synthetic init. Weights stored as (in_dim, out_dim)."""
    params = {}
    dims = [input_dim] + list(hidden_dims)
    keys = jax.random.split(key, 2 * len(hidden_dims) + 4)
    ki = 0
    for li, (din, dout) in enumerate(zip(dims[:-1], dims[1:]), start=1):
        scale = 1.0 / jnp.sqrt(jnp.float32(din))
        params[f"w{li}"] = jax.random.uniform(keys[ki], (din, dout), jnp.float32, -scale, scale); ki += 1
        params[f"b{li}"] = jax.random.uniform(keys[ki], (dout,), jnp.float32, -scale, scale); ki += 1
        params[f"g{li}"] = jnp.ones((dout,), jnp.float32)    # LayerNorm weight
        params[f"be{li}"] = jnp.zeros((dout,), jnp.float32)  # LayerNorm bias
    dlast = hidden_dims[-1]
    scale = 1.0 / jnp.sqrt(jnp.float32(dlast))
    params["wm"] = jax.random.uniform(keys[ki], (dlast, action_dim), jnp.float32, -scale, scale); ki += 1
    params["bm"] = jax.random.uniform(keys[ki], (action_dim,), jnp.float32, -scale, scale); ki += 1
    params["ws"] = jax.random.uniform(keys[ki], (dlast, action_dim), jnp.float32, -scale, scale); ki += 1
    params["bs"] = jax.random.uniform(keys[ki], (action_dim,), jnp.float32, -scale, scale); ki += 1
    return params


def reference_forward(x, params):
    """Pure-JAX f32 reference (PyTorch semantics) for correctness checking."""
    def layer(h, w, b, g, be):
        h = h @ w + b
        mu = jnp.mean(h, axis=-1, keepdims=True)
        var = jnp.mean((h - mu) ** 2, axis=-1, keepdims=True)
        h = (h - mu) / jnp.sqrt(var + _LN_EPS) * g + be
        return jnp.where(h > 0, h, 0.1 * h)

    h = layer(x, params["w1"], params["b1"], params["g1"], params["be1"])
    h = layer(h, params["w2"], params["b2"], params["g2"], params["be2"])
    h = layer(h, params["w3"], params["b3"], params["g3"], params["be3"])
    mean = jax.nn.sigmoid(h @ params["wm"] + params["bm"])
    std = jnp.exp(jnp.clip(h @ params["ws"] + params["bs"], -20.0, 2.0))
    return mean, std, h


if __name__ == "__main__":
    # Small shapes consistent with the module: obs+latent -> 3 hidden layers -> heads.
    obs_dim, latent_dim = 24, 8
    input_dim = obs_dim + latent_dim          # 32
    hidden_dims = (128, 128, 128)
    action_dim = 8

    key = jax.random.PRNGKey(0)
    kx, kp, kx2 = jax.random.split(key, 3)
    params = init_params(kp, input_dim, hidden_dims, action_dim)
    prep = prepare_params(params, action_dim)       # one-time packing (hoisted)

    # Loose tolerance: bf16 matmul operands + bf16 head store + approx reciprocal;
    # reference is pure f32.
    tol = dict(atol=5e-2, rtol=5e-2)

    # 1) small inference batch -> single full-dim block.
    x = jax.random.normal(kx, (8, input_dim), jnp.float32)
    mean, std, feat = connect_policy_forward(x, prep, action_dim=action_dim)
    jax.block_until_ready((mean, std, feat))
    mean_r, std_r, feat_r = reference_forward(x, params)
    assert mean.shape == (8, action_dim) and std.shape == (8, action_dim)
    assert feat.shape == (8, hidden_dims[-1])
    assert jnp.allclose(mean, mean_r, **tol)
    assert jnp.allclose(std, std_r, **tol)
    assert jnp.allclose(feat, feat_r, **tol)

    # 2) throughput batch, non-divisible size -> padded multi-step grid
    #    (>=2 parallel steps, exercises the masked tail path).
    xb = jax.random.normal(kx2, (200, input_dim), jnp.float32)
    mean2, std2, feat2 = connect_policy_forward(xb, prep, action_dim=action_dim)
    jax.block_until_ready((mean2, std2, feat2))
    mean2_r, std2_r, feat2_r = reference_forward(xb, params)
    assert mean2.shape == (200, action_dim) and feat2.shape == (200, hidden_dims[-1])
    assert jnp.allclose(mean2, mean2_r, **tol)
    assert jnp.allclose(std2, std2_r, **tol)
    assert jnp.allclose(feat2, feat2_r, **tol)

    print("KERNEL_OK")
</pallas_src>

<mosaic_0001>
module attributes {stable_mosaic.version = 11 : i64} {
  func.func @_connect_policy_kernel(%arg0: i32, %arg1: memref<8x32xbf16, #tpu.memory_space<vmem>>, %arg2: memref<32x128xbf16, #tpu.memory_space<vmem>>, %arg3: memref<128x128xbf16, #tpu.memory_space<vmem>>, %arg4: memref<128x128xbf16, #tpu.memory_space<vmem>>, %arg5: memref<9x128xf32, #tpu.memory_space<vmem>>, %arg6: memref<128x128xbf16, #tpu.memory_space<vmem>>, %arg7: memref<1x128xf32, #tpu.memory_space<vmem>>, %arg8: memref<8x128xbf16, #tpu.memory_space<vmem>>, %arg9: memref<8x128xf32, #tpu.memory_space<vmem>>) attributes {dimension_semantics = [#tpu.dimension_semantics<parallel>], iteration_bounds = array<i64: 1>, scalar_prefetch = 0 : i64, scratch_operands = 0 : i64, tpu.core_type = #tpu.core_type<tc>, window_params = [{transform_indices = @transform_0, window_bounds = array<i64: 8, 32>}, {pipeline_mode = #tpu.pipeline_mode<synchronous>, transform_indices = @transform_1, window_bounds = array<i64: 32, 128>}, {pipeline_mode = #tpu.pipeline_mode<synchronous>, transform_indices = @transform_2, window_bounds = array<i64: 128, 128>}, {pipeline_mode = #tpu.pipeline_mode<synchronous>, transform_indices = @transform_3, window_bounds = array<i64: 128, 128>}, {pipeline_mode = #tpu.pipeline_mode<synchronous>, transform_indices = @transform_4, window_bounds = array<i64: 9, 128>}, {pipeline_mode = #tpu.pipeline_mode<synchronous>, transform_indices = @transform_5, window_bounds = array<i64: 128, 128>}, {pipeline_mode = #tpu.pipeline_mode<synchronous>, transform_indices = @transform_6, window_bounds = array<i64: 1, 128>}, {transform_indices = @transform_7, window_bounds = array<i64: 8, 128>}, {transform_indices = @transform_8, window_bounds = array<i64: 8, 128>}]} {
    %c0 = arith.constant 0 : index
    %c0_0 = arith.constant 0 : index
    %0 = vector.load %arg1[%c0, %c0_0] : memref<8x32xbf16, #tpu.memory_space<vmem>>, vector<8x32xbf16>
    %c0_1 = arith.constant 0 : index
    %c0_2 = arith.constant 0 : index
    %1 = vector.load %arg2[%c0_1, %c0_2] : memref<32x128xbf16, #tpu.memory_space<vmem>>, vector<32x128xbf16>
    %c0_3 = arith.constant 0 : index
    %c0_4 = arith.constant 0 : index
    %2 = vector.load %arg5[%c0_3, %c0_4] : memref<9x128xf32, #tpu.memory_space<vmem>>, vector<1x128xf32>
    %c1 = arith.constant 1 : index
    %c0_5 = arith.constant 0 : index
    %3 = vector.load %arg5[%c1, %c0_5] : memref<9x128xf32, #tpu.memory_space<vmem>>, vector<1x128xf32>
    %c2 = arith.constant 2 : index
    %c0_6 = arith.constant 0 : index
    %4 = vector.load %arg5[%c2, %c0_6] : memref<9x128xf32, #tpu.memory_space<vmem>>, vector<1x128xf32>
    %cst = arith.constant dense<0.000000e+00> : vector<8x128xf32>
    %5 = tpu.matmul %0, %1, %cst {dimension_numbers = #tpu.dot_dimension_numbers<[1], [0], [0], [1], [0, 0, 1, 1], [], []>} : vector<8x32xbf16>, vector<32x128xbf16>, vector<8x128xf32> -> vector<8x128xf32>
    %6 = vector.broadcast %2 : vector<1x128xf32> to vector<8x128xf32>
    %7 = arith.addf %5, %6 : vector<8x128xf32>
    %8 = arith.mulf %7, %7 : vector<8x128xf32>
    %9 = tpu.concatenate %7, %8 in 1 : vector<8x128xf32>, vector<8x128xf32> -> vector<8x256xf32>
    %cst_7 = arith.constant 1.000000e+00 : f32
    %10 = vector.broadcast %cst_7 : f32 to vector<128x1xf32>
    %cst_8 = arith.constant 0.000000e+00 : f32
    %11 = vector.broadcast %cst_8 : f32 to vector<128x1xf32>
    %12 = tpu.concatenate %10, %11 in 1 : vector<128x1xf32>, vector<128x1xf32> -> vector<128x2xf32>
    %cst_9 = arith.constant 0.000000e+00 : f32
    %13 = vector.broadcast %cst_9 : f32 to vector<128x1xf32>
    %cst_10 = arith.constant 1.000000e+00 : f32
    %14 = vector.broadcast %cst_10 : f32 to vector<128x1xf32>
    %15 = tpu.concatenate %13, %14 in 1 : vector<128x1xf32>, vector<128x1xf32> -> vector<128x2xf32>
    %16 = tpu.concatenate %12, %15 in 0 : vector<128x2xf32>, vector<128x2xf32> -> vector<256x2xf32>
    %cst_11 = arith.constant dense<0.000000e+00> : vector<8x2xf32>
    %17 = tpu.matmul %9, %16, %cst_11 {dimension_numbers = #tpu.dot_dimension_numbers<[1], [0], [0], [1], [0, 0, 1, 1], [], []>, precision = #tpu.contract_precision<fp32>} : vector<8x256xf32>, vector<256x2xf32>, vector<8x2xf32> -> vector<8x2xf32>
    %18 = vector.extract_strided_slice %17 {offsets = [0, 0], sizes = [8, 1], strides = [1, 1]} : vector<8x2xf32> to vector<8x1xf32>
    %cst_12 = arith.constant 7.812500e-03 : f32
    %19 = vector.broadcast %cst_12 : f32 to vector<8x1xf32>
    %20 = arith.mulf %18, %19 : vector<8x1xf32>
    %21 = vector.extract_strided_slice %17 {offsets = [0, 1], sizes = [8, 1], strides = [1, 1]} : vector<8x2xf32> to vector<8x1xf32>
    %cst_13 = arith.constant 7.812500e-03 : f32
    %22 = vector.broadcast %cst_13 : f32 to vector<8x1xf32>
    %23 = arith.mulf %21, %22 : vector<8x1xf32>
    %24 = arith.mulf %20, %20 : vector<8x1xf32>
    %25 = arith.subf %23, %24 : vector<8x1xf32>
    %cst_14 = arith.constant 0.000000e+00 : f32
    %26 = vector.broadcast %cst_14 : f32 to vector<8x1xf32>
    %27 = arith.maximumf %25, %26 : vector<8x1xf32>
    %28 = vector.broadcast %20 : vector<8x1xf32> to vector<8x128xf32>
    %29 = arith.subf %7, %28 : vector<8x128xf32>
    %cst_15 = arith.constant 9.99999974E-6 : f32
    %30 = vector.broadcast %cst_15 : f32 to vector<8x1xf32>
    %31 = arith.addf %27, %30 : vector<8x1xf32>
    %32 = math.rsqrt %31 : vector<8x1xf32>
    %33 = vector.broadcast %32 : vector<8x1xf32> to vector<8x128xf32>
    %34 = arith.mulf %29, %33 : vector<8x128xf32>
    %35 = vector.broadcast %3 : vector<1x128xf32> to vector<8x128xf32>
    %36 = arith.mulf %34, %35 : vector<8x128xf32>
    %37 = vector.broadcast %4 : vector<1x128xf32> to vector<8x128xf32>
    %38 = arith.addf %36, %37 : vector<8x128xf32>
    %cst_16 = arith.constant 1.000000e-01 : f32
    %39 = vector.broadcast %cst_16 : f32 to vector<8x128xf32>
    %40 = arith.mulf %39, %38 : vector<8x128xf32>
    %41 = arith.maximumf %38, %40 : vector<8x128xf32>
    %42 = arith.truncf %41 : vector<8x128xf32> to vector<8x128xbf16>
    %c0_17 = arith.constant 0 : index
    %c0_18 = arith.constant 0 : index
    %43 = vector.load %arg3[%c0_17, %c0_18] : memref<128x128xbf16, #tpu.memory_space<vmem>>, vector<128x128xbf16>
    %c3 = arith.constant 3 : index
    %c0_19 = arith.constant 0 : index
    %44 = vector.load %arg5[%c3, %c0_19] : memref<9x128xf32, #tpu.memory_space<vmem>>, vector<1x128xf32>
    %c4 = arith.constant 4 : index
    %c0_20 = arith.constant 0 : index
    %45 = vector.load %arg5[%c4, %c0_20] : memref<9x128xf32, #tpu.memory_space<vmem>>, vector<1x128xf32>
    %c5 = arith.constant 5 : index
    %c0_21 = arith.constant 0 : index
    %46 = vector.load %arg5[%c5, %c0_21] : memref<9x128xf32, #tpu.memory_space<vmem>>, vector<1x128xf32>
    %cst_22 = arith.constant dense<0.000000e+00> : vector<8x128xf32>
    %47 = tpu.matmul %42, %43, %cst_22 {dimension_numbers = #tpu.dot_dimension_numbers<[1], [0], [0], [1], [0, 0, 1, 1], [], []>} : vector<8x128xbf16>, vector<128x128xbf16>, vector<8x128xf32> -> vector<8x128xf32>
    %48 = vector.broadcast %44 : vector<1x128xf32> to vector<8x128xf32>
    %49 = arith.addf %47, %48 : vector<8x128xf32>
    %50 = arith.mulf %49, %49 : vector<8x128xf32>
    %51 = tpu.concatenate %49, %50 in 1 : vector<8x128xf32>, vector<8x128xf32> -> vector<8x256xf32>
    %cst_23 = arith.constant 1.000000e+00 : f32
    %52 = vector.broadcast %cst_23 : f32 to vector<128x1xf32>
    %cst_24 = arith.constant 0.000000e+00 : f32
    %53 = vector.broadcast %cst_24 : f32 to vector<128x1xf32>
    %54 = tpu.concatenate %52, %53 in 1 : vector<128x1xf32>, vector<128x1xf32> -> vector<128x2xf32>
    %cst_25 = arith.constant 0.000000e+00 : f32
    %55 = vector.broadcast %cst_25 : f32 to vector<128x1xf32>
    %cst_26 = arith.constant 1.000000e+00 : f32
    %56 = vector.broadcast %cst_26 : f32 to vector<128x1xf32>
    %57 = tpu.concatenate %55, %56 in 1 : vector<128x1xf32>, vector<128x1xf32> -> vector<128x2xf32>
    %58 = tpu.concatenate %54, %57 in 0 : vector<128x2xf32>, vector<128x2xf32> -> vector<256x2xf32>
    %cst_27 = arith.constant dense<0.000000e+00> : vector<8x2xf32>
    %59 = tpu.matmul %51, %58, %cst_27 {dimension_numbers = #tpu.dot_dimension_numbers<[1], [0], [0], [1], [0, 0, 1, 1], [], []>, precision = #tpu.contract_precision<fp32>} : vector<8x256xf32>, vector<256x2xf32>, vector<8x2xf32> -> vector<8x2xf32>
    %60 = vector.extract_strided_slice %59 {offsets = [0, 0], sizes = [8, 1], strides = [1, 1]} : vector<8x2xf32> to vector<8x1xf32>
    %cst_28 = arith.constant 7.812500e-03 : f32
    %61 = vector.broadcast %cst_28 : f32 to vector<8x1xf32>
    %62 = arith.mulf %60, %61 : vector<8x1xf32>
    %63 = vector.extract_strided_slice %59 {offsets = [0, 1], sizes = [8, 1], strides = [1, 1]} : vector<8x2xf32> to vector<8x1xf32>
    %cst_29 = arith.constant 7.812500e-03 : f32
    %64 = vector.broadcast %cst_29 : f32 to vector<8x1xf32>
    %65 = arith.mulf %63, %64 : vector<8x1xf32>
    %66 = arith.mulf %62, %62 : vector<8x1xf32>
    %67 = arith.subf %65, %66 : vector<8x1xf32>
    %cst_30 = arith.constant 0.000000e+00 : f32
    %68 = vector.broadcast %cst_30 : f32 to vector<8x1xf32>
    %69 = arith.maximumf %67, %68 : vector<8x1xf32>
    %70 = vector.broadcast %62 : vector<8x1xf32> to vector<8x128xf32>
    %71 = arith.subf %49, %70 : vector<8x128xf32>
    %cst_31 = arith.constant 9.99999974E-6 : f32
    %72 = vector.broadcast %cst_31 : f32 to vector<8x1xf32>
    %73 = arith.addf %69, %72 : vector<8x1xf32>
    %74 = math.rsqrt %73 : vector<8x1xf32>
    %75 = vector.broadcast %74 : vector<8x1xf32> to vector<8x128xf32>
    %76 = arith.mulf %71, %75 : vector<8x128xf32>
    %77 = vector.broadcast %45 : vector<1x128xf32> to vector<8x128xf32>
    %78 = arith.mulf %76, %77 : vector<8x128xf32>
    %79 = vector.broadcast %46 : vector<1x128xf32> to vector<8x128xf32>
    %80 = arith.addf %78, %79 : vector<8x128xf32>
    %cst_32 = arith.constant 1.000000e-01 : f32
    %81 = vector.broadcast %cst_32 : f32 to vector<8x128xf32>
    %82 = arith.mulf %81, %80 : vector<8x128xf32>
    %83 = arith.maximumf %80, %82 : vector<8x128xf32>
    %84 = arith.truncf %83 : vector<8x128xf32> to vector<8x128xbf16>
    %c0_33 = arith.constant 0 : index
    %c0_34 = arith.constant 0 : index
    %85 = vector.load %arg4[%c0_33, %c0_34] : memref<128x128xbf16, #tpu.memory_space<vmem>>, vector<128x128xbf16>
    %c6 = arith.constant 6 : index
    %c0_35 = arith.constant 0 : index
    %86 = vector.load %arg5[%c6, %c0_35] : memref<9x128xf32, #tpu.memory_space<vmem>>, vector<1x128xf32>
    %c7 = arith.constant 7 : index
    %c0_36 = arith.constant 0 : index
    %87 = vector.load %arg5[%c7, %c0_36] : memref<9x128xf32, #tpu.memory_space<vmem>>, vector<1x128xf32>
    %c8 = arith.constant 8 : index
    %c0_37 = arith.constant 0 : index
    %88 = vector.load %arg5[%c8, %c0_37] : memref<9x128xf32, #tpu.memory_space<vmem>>, vector<1x128xf32>
    %cst_38 = arith.constant dense<0.000000e+00> : vector<8x128xf32>
    %89 = tpu.matmul %84, %85, %cst_38 {dimension_numbers = #tpu.dot_dimension_numbers<[1], [0], [0], [1], [0, 0, 1, 1], [], []>} : vector<8x128xbf16>, vector<128x128xbf16>, vector<8x128xf32> -> vector<8x128xf32>
    %90 = vector.broadcast %86 : vector<1x128xf32> to vector<8x128xf32>
    %91 = arith.addf %89, %90 : vector<8x128xf32>
    %92 = arith.mulf %91, %91 : vector<8x128xf32>
    %93 = tpu.concatenate %91, %92 in 1 : vector<8x128xf32>, vector<8x128xf32> -> vector<8x256xf32>
    %cst_39 = arith.constant 1.000000e+00 : f32
    %94 = vector.broadcast %cst_39 : f32 to vector<128x1xf32>
    %cst_40 = arith.constant 0.000000e+00 : f32
    %95 = vector.broadcast %cst_40 : f32 to vector<128x1xf32>
    %96 = tpu.concatenate %94, %95 in 1 : vector<128x1xf32>, vector<128x1xf32> -> vector<128x2xf32>
    %cst_41 = arith.constant 0.000000e+00 : f32
    %97 = vector.broadcast %cst_41 : f32 to vector<128x1xf32>
    %cst_42 = arith.constant 1.000000e+00 : f32
    %98 = vector.broadcast %cst_42 : f32 to vector<128x1xf32>
    %99 = tpu.concatenate %97, %98 in 1 : vector<128x1xf32>, vector<128x1xf32> -> vector<128x2xf32>
    %100 = tpu.concatenate %96, %99 in 0 : vector<128x2xf32>, vector<128x2xf32> -> vector<256x2xf32>
    %cst_43 = arith.constant dense<0.000000e+00> : vector<8x2xf32>
    %101 = tpu.matmul %93, %100, %cst_43 {dimension_numbers = #tpu.dot_dimension_numbers<[1], [0], [0], [1], [0, 0, 1, 1], [], []>, precision = #tpu.contract_precision<fp32>} : vector<8x256xf32>, vector<256x2xf32>, vector<8x2xf32> -> vector<8x2xf32>
    %102 = vector.extract_strided_slice %101 {offsets = [0, 0], sizes = [8, 1], strides = [1, 1]} : vector<8x2xf32> to vector<8x1xf32>
    %cst_44 = arith.constant 7.812500e-03 : f32
    %103 = vector.broadcast %cst_44 : f32 to vector<8x1xf32>
    %104 = arith.mulf %102, %103 : vector<8x1xf32>
    %105 = vector.extract_strided_slice %101 {offsets = [0, 1], sizes = [8, 1], strides = [1, 1]} : vector<8x2xf32> to vector<8x1xf32>
    %cst_45 = arith.constant 7.812500e-03 : f32
    %106 = vector.broadcast %cst_45 : f32 to vector<8x1xf32>
    %107 = arith.mulf %105, %106 : vector<8x1xf32>
    %108 = arith.mulf %104, %104 : vector<8x1xf32>
    %109 = arith.subf %107, %108 : vector<8x1xf32>
    %cst_46 = arith.constant 0.000000e+00 : f32
    %110 = vector.broadcast %cst_46 : f32 to vector<8x1xf32>
    %111 = arith.maximumf %109, %110 : vector<8x1xf32>
    %112 = vector.broadcast %104 : vector<8x1xf32> to vector<8x128xf32>
    %113 = arith.subf %91, %112 : vector<8x128xf32>
    %cst_47 = arith.constant 9.99999974E-6 : f32
    %114 = vector.broadcast %cst_47 : f32 to vector<8x1xf32>
    %115 = arith.addf %111, %114 : vector<8x1xf32>
    %116 = math.rsqrt %115 : vector<8x1xf32>
    %117 = vector.broadcast %116 : vector<8x1xf32> to vector<8x128xf32>
    %118 = arith.mulf %113, %117 : vector<8x128xf32>
    %119 = vector.broadcast %87 : vector<1x128xf32> to vector<8x128xf32>
    %120 = arith.mulf %118, %119 : vector<8x128xf32>
    %121 = vector.broadcast %88 : vector<1x128xf32> to vector<8x128xf32>
    %122 = arith.addf %120, %121 : vector<8x128xf32>
    %cst_48 = arith.constant 1.000000e-01 : f32
    %123 = vector.broadcast %cst_48 : f32 to vector<8x128xf32>
    %124 = arith.mulf %123, %122 : vector<8x128xf32>
    %125 = arith.maximumf %122, %124 : vector<8x128xf32>
    %c0_49 = arith.constant 0 : index
    %c0_50 = arith.constant 0 : index
    %126 = vector.load %arg9[%c0_49, %c0_50] : memref<8x128xf32, #tpu.memory_space<vmem>>, vector<8x128xf32>
    tpu.vector_store %arg9[%c0_49, %c0_50], %125 {strides = array<i32>} : memref<8x128xf32, #tpu.memory_space<vmem>>, vector<8x128xf32>,
    %127 = arith.truncf %125 : vector<8x128xf32> to vector<8x128xbf16>
    %c0_51 = arith.constant 0 : index
    %c0_52 = arith.constant 0 : index
    %128 = vector.load %arg6[%c0_51, %c0_52] : memref<128x128xbf16, #tpu.memory_space<vmem>>, vector<128x128xbf16>
    %cst_53 = arith.constant dense<0.000000e+00> : vector<8x128xf32>
    %129 = tpu.matmul %127, %128, %cst_53 {dimension_numbers = #tpu.dot_dimension_numbers<[1], [0], [0], [1], [0, 0, 1, 1], [], []>} : vector<8x128xbf16>, vector<128x128xbf16>, vector<8x128xf32> -> vector<8x128xf32>
    %c0_54 = arith.constant 0 : index
    %c0_55 = arith.constant 0 : index
    %130 = vector.load %arg7[%c0_54, %c0_55] : memref<1x128xf32, #tpu.memory_space<vmem>>, vector<1x128xf32>
    %131 = vector.broadcast %130 : vector<1x128xf32> to vector<8x128xf32>
    %132 = arith.addf %129, %131 : vector<8x128xf32>
    %133 = tpu.iota {dimensions = array<i32: 1>} : vector<8x128xi32>
    %c8_i32 = arith.constant 8 : i32
    %134 = vector.broadcast %c8_i32 : i32 to vector<8x128xi32>
    %135 = arith.cmpi slt, %133, %134 : vector<8x128xi32>
    %cst_56 = arith.constant 0.000000e+00 : f32
    %136 = vector.broadcast %cst_56 : f32 to vector<8x128xf32>
    %137 = arith.subf %136, %132 : vector<8x128xf32>
    %cst_57 = arith.constant -2.000000e+01 : f32
    %cst_58 = arith.constant 2.000000e+00 : f32
    %138 = vector.broadcast %cst_57 : f32 to vector<8x128xf32>
    %139 = arith.maximumf %138, %132 : vector<8x128xf32>
    %140 = vector.broadcast %cst_58 : f32 to vector<8x128xf32>
    %141 = arith.minimumf %140, %139 : vector<8x128xf32>
    %142 = arith.select %135, %137, %141 : vector<8x128xi1>, vector<8x128xf32>
    %143 = math.exp %142 : vector<8x128xf32>
    %cst_59 = arith.constant 1.000000e+00 : f32
    %144 = vector.broadcast %cst_59 : f32 to vector<8x128xf32>
    %145 = arith.addf %144, %143 : vector<8x128xf32>
    %146 = tpu.reciprocal %145 {approx = true} : vector<8x128xf32> -> vector<8x128xf32>
    %147 = arith.select %135, %146, %143 : vector<8x128xi1>, vector<8x128xf32>
    %148 = arith.truncf %147 : vector<8x128xf32> to vector<8x128xbf16>
    %c0_60 = arith.constant 0 : index
    %c0_61 = arith.constant 0 : index
    %149 = vector.load %arg8[%c0_60, %c0_61] : memref<8x128xbf16, #tpu.memory_space<vmem>>, vector<8x128xbf16>
    tpu.vector_store %arg8[%c0_60, %c0_61], %148 {strides = array<i32>} : memref<8x128xbf16, #tpu.memory_space<vmem>>, vector<8x128xbf16>,
    return
  }
  func.func @transform_0(%arg0: i32) -> (i32, i32) {
    %c0_i32 = arith.constant 0 : i32
    %c0_i32_0 = arith.constant 0 : i32
    return %arg0, %c0_i32 : i32, i32
  }
  func.func @transform_1(%arg0: i32) -> (i32, i32) {
    %c0_i32 = arith.constant 0 : i32
    %c0_i32_0 = arith.constant 0 : i32
    %c0_i32_1 = arith.constant 0 : i32
    return %c0_i32, %c0_i32_0 : i32, i32
  }
  func.func @transform_2(%arg0: i32) -> (i32, i32) {
    %c0_i32 = arith.constant 0 : i32
    %c0_i32_0 = arith.constant 0 : i32
    %c0_i32_1 = arith.constant 0 : i32
    return %c0_i32, %c0_i32_0 : i32, i32
  }
  func.func @transform_3(%arg0: i32) -> (i32, i32) {
    %c0_i32 = arith.constant 0 : i32
    %c0_i32_0 = arith.constant 0 : i32
    %c0_i32_1 = arith.constant 0 : i32
    return %c0_i32, %c0_i32_0 : i32, i32
  }
  func.func @transform_4(%arg0: i32) -> (i32, i32) {
    %c0_i32 = arith.constant 0 : i32
    %c0_i32_0 = arith.constant 0 : i32
    %c0_i32_1 = arith.constant 0 : i32
    return %c0_i32, %c0_i32_0 : i32, i32
  }
  func.func @transform_5(%arg0: i32) -> (i32, i32) {
    %c0_i32 = arith.constant 0 : i32
    %c0_i32_0 = arith.constant 0 : i32
    %c0_i32_1 = arith.constant 0 : i32
    return %c0_i32, %c0_i32_0 : i32, i32
  }
  func.func @transform_6(%arg0: i32) -> (i32, i32) {
    %c0_i32 = arith.constant 0 : i32
    %c0_i32_0 = arith.constant 0 : i32
    %c0_i32_1 = arith.constant 0 : i32
    return %c0_i32, %c0_i32_0 : i32, i32
  }
  func.func @transform_7(%arg0: i32) -> (i32, i32) {
    %c0_i32 = arith.constant 0 : i32
    %c0_i32_0 = arith.constant 0 : i32
    return %arg0, %c0_i32 : i32, i32
  }
  func.func @transform_8(%arg0: i32) -> (i32, i32) {
    %c0_i32 = arith.constant 0 : i32
    %c0_i32_0 = arith.constant 0 : i32
    return %arg0, %c0_i32 : i32, i32
  }
}

</mosaic_0001>

<bundles_post_ra>
// kernel: connect_policy_forward.1
= control target key start
LH: loop header
LB: loop body
LE: loop exit
PB: predicated region body
PF: predicated region fallthrough
CT: control target
= control target key end

     0   :  { %14 = vsyncpa [#allocation3], 0  ;;  %s5431_s0 = inlined_call_operand.vmem [shape: bf16[8,32], index: 0, kind: input, shape index: {}]   ;;  %s5432_s1 = inlined_call_operand.vmem [shape: bf16[32,128], index: 1, kind: input, shape index: {}]   ;;  %s5433_s2 = inlined_call_operand.hbm [shape: bf16[128,128], index: 2, kind: input, shape index: {}]   ;;  %s5434_s3 = inlined_call_operand.hbm [shape: bf16[128,128], index: 3, kind: input, shape index: {}]   ;;  %s5435_s4 = inlined_call_operand.hbm [shape: f32[9,128], index: 4, kind: input, shape index: {}]   ;;  %s5436_s5 = inlined_call_operand.hbm [shape: bf16[128,128], index: 5, kind: input, shape index: {}]   ;;  %s5437_s6 = inlined_call_operand.vmem [shape: f32[1,128], index: 6, kind: input, shape index: {}]   ;;  %s5438_s7 = inlined_call_operand.vmem [shape: bf16[8,128], index: 7, kind: output, shape index: {0}]   ;;  %s5439_s8 = inlined_call_operand.hbm [shape: f32[8,128], index: 8, kind: output, shape index: {1}]  }
   0x1   :  { %15 = vsyncpa [#allocation6], 0 }
   0x2   :  { %16 = vsyncpa [#allocation9], 0 }
   0x3   :  { %17 = vsyncpa [#allocation4], 0  ;;  %s4590_s27 = smov [#allocation5]   ;;  %s4591_s29 = smov [#allocation2]  }
   0x4   :  { %s39_s28 = sshll.u32 %s4590_s27, 4  ;;  %s27_s30 = sshll.u32 %s4591_s29, 4  ;;  %s40_s28 = int_to_ptr.vmem [resolvable:$true] %s39_s28  ;;  %s4651_s30 = int_to_ptr.vmem [resolvable:$true] %s27_s30 }
   0x5   :  { %s4472_s11 = scalar_lea.hbm %s5434_s3, 1024 }
   0x6   :  { %p4473_p0 = scmp.ne.s32.totalorder %s5434_s3, %s4472_s11  ;;  %p4476_p1 = scmp.lt.u32.totalorder %s4472_s11, %s5434_s3 }
   0x8   :  { %p4478_p2 = pnand %p4476_p1, %p4473_p0 }
   0xa   :  { %4481 = shalt.err (!%p4478_p2)
}
   0xb   :  { %s4482_s16 = scalar_lea.vmem %s40_s28, 1024  ;;  %p4487_p4 = scmp.lt.s32.totalorder %s40_s28, %s40_s28 }
   0xc   :  { %p4483_p3 = scmp.ne.s32.totalorder %s40_s28, %s4482_s16  ;;  %p4488_p5 = scmp.lt.s32.totalorder %s4482_s16, %s4482_s16 }
   0xe   :  { %p4489_p6 = por %p4488_p5, %p4487_p4 }
  0x10   :  { %p4490_p7 = pnand %p4489_p6, %p4483_p3 }
  0x12   :  { %4493 = shalt.err (!%p4490_p7)
}
  0x13   :  { %s4592_s17 = smov 64   ;;  %s4593_s18 = smov 4  }
  0x14   :  { %45 = dma.hbm_to_vmem [thread:$0]  %s5434_s3, 1024, %s40_s28, [#allocation6], %s4592_s17, %s4592_s17, %s4593_s18  }
  0x15   :  { %s4494_s23 = scalar_lea.hbm %s5433_s2, 1024 }
  0x16   :  { %p4495_p8 = scmp.ne.s32.totalorder %s5433_s2, %s4494_s23  ;;  %p4498_p9 = scmp.lt.u32.totalorder %s4494_s23, %s5433_s2 }
  0x18   :  { %p4500_p10 = pnand %p4498_p9, %p4495_p8 }
  0x1a   :  { %4503 = shalt.err (!%p4500_p10)
}
  0x1b   :  { %s4504_s29 = scalar_lea.vmem %s4651_s30, 1024  ;;  %p4509_p12 = scmp.lt.s32.totalorder %s4651_s30, %s4651_s30 }
  0x1c   :  { %p4505_p11 = scmp.ne.s32.totalorder %s4651_s30, %s4504_s29  ;;  %p4510_p13 = scmp.lt.s32.totalorder %s4504_s29, %s4504_s29 }
  0x1e   :  { %p4511_p0 = por %p4510_p13, %p4509_p12 }
  0x20   :  { %p4512_p1 = pnand %p4511_p0, %p4505_p11 }
  0x22   :  { %4515 = shalt.err (!%p4512_p1)
}
  0x23   :  { %33 = dma.hbm_to_vmem [thread:$0]  %s5433_s2, 1024, %s4651_s30, [#allocation3], %s4592_s17, %s4592_s17, %s4593_s18  }
  0x24   :  { %s4594_s9 = smov [#allocation7]   ;;  %s4516_s13 = scalar_lea.hbm %s5435_s4, 256 }
  0x25   :  { %s51_s10 = sshll.u32 %s4594_s9, 4  ;;  %p4517_p2 = scmp.ne.s32.totalorder %s5435_s4, %s4516_s13  ;;  %s52_s10 = int_to_ptr.vmem [resolvable:$true] %s51_s10 }
  0x26   :  { %p4520_p3 = scmp.lt.u32.totalorder %s4516_s13, %s5435_s4 }
  0x28   :  { %p4522_p4 = pnand %p4520_p3, %p4517_p2 }
  0x2a   :  { %4525 = shalt.err (!%p4522_p4)
}
  0x2b   :  { %s4526_s20 = scalar_lea.vmem %s52_s10, 256  ;;  %p4531_p6 = scmp.lt.s32.totalorder %s52_s10, %s52_s10 }
  0x2c   :  { %p4527_p5 = scmp.ne.s32.totalorder %s52_s10, %s4526_s20  ;;  %p4532_p7 = scmp.lt.s32.totalorder %s4526_s20, %s4526_s20 }
  0x2e   :  { %p4533_p8 = por %p4532_p7, %p4531_p6 }
  0x30   :  { %p4534_p9 = pnand %p4533_p8, %p4527_p5 }
  0x32   :  { %4537 = shalt.err (!%p4534_p9)
}
  0x33   :  { %s4595_s2 = smov 128   ;;  %s4596_s30 = smov 8  }
  0x34   :  { %57 = dma.hbm_to_vmem [thread:$0]  %s5435_s4, 256, %s52_s10, [#allocation6], %s4595_s2, %s4595_s2, %s4596_s30  }
  0x35   :  { %s4597_s23 = smov [#allocation8]   ;;  %s4538_s27 = scalar_lea.hbm %s5436_s5, 1024 }
  0x36   :  { %s63_s24 = sshll.u32 %s4597_s23, 4  ;;  %p4539_p10 = scmp.ne.s32.totalorder %s5436_s5, %s4538_s27  ;;  %s64_s24 = int_to_ptr.vmem [resolvable:$true] %s63_s24 }
  0x37   :  { %p4542_p11 = scmp.lt.u32.totalorder %s4538_s27, %s5436_s5 }
  0x39   :  { %p4544_p12 = pnand %p4542_p11, %p4539_p10 }
  0x3b   :  { %4547 = shalt.err (!%p4544_p12)
}
  0x3c   :  { %s4548_s11 = scalar_lea.vmem %s64_s24, 1024  ;;  %p4553_p0 = scmp.lt.s32.totalorder %s64_s24, %s64_s24 }
  0x3d   :  { %p4549_p13 = scmp.ne.s32.totalorder %s64_s24, %s4548_s11  ;;  %p4554_p1 = scmp.lt.s32.totalorder %s4548_s11, %s4548_s11 }
  0x3f   :  { %p4555_p2 = por %p4554_p1, %p4553_p0 }
  0x41   :  { %p4556_p3 = pnand %p4555_p2, %p4549_p13 }
  0x43   :  { %4559 = shalt.err (!%p4556_p3)
}
  0x44   :  { %69 = dma.hbm_to_vmem [thread:$0]  %s5436_s5, 1024, %s64_s24, [#allocation9], %s4592_s17, %s4592_s17, %s4593_s18  }
  0x45   :  { %4582 = dma.done.wait [#allocation3], 1024  }
  0x46   :  { %4583 = vsyncadd [#allocation3], 4294966272 }
  0x47   :  { %4584 = dma.done.wait [#allocation6], 1280  }
  0x48   :  { %4585 = vsyncadd [#allocation6], 4294966016 }
  0x49   :  { %4586 = dma.done.wait [#allocation9], 1024  }
  0x4a   :  { %4587 = vsyncadd [#allocation9], 4294966272  ;;  %vm154_vm0 = vcmask 7168   ;;  %v4598_v0 = vmov 0.0   ;;  %vm4599_vm1 = vmmov 0   ;;  %v4600_v2 = vmov 1.0  }
  0x4b   :  { %3772 = vmatprep.subr.bf16.mxu0 %v4598_v0  ;;  %3776 = vmatprep.mubr.msk.bf16.mxu0 %vm4599_vm1, %v4598_v0  ;;  %vm2663_vm2 = vmneg %vm154_vm0  ;;  %v155_v1 = vsel %vm154_vm0, 1.0, %v4598_v0  ;;  %v156_v3 = vsel %vm154_vm0, 0.0, %v4600_v2  ;;  %v4601_v8 = vmov 1.0|1.0   ;;  %v4436_v12 = vld [vmem:[%s5432_s1] sm:$0xff]   ;;  %v4437_v14 = vld [vmem:[%s5432_s1 + $0x8] sm:$0xff]  }
  0x4c   :  { %vm4719_vm3 = vmpackc.low %vm2663_vm2, %vm2663_vm2  ;;  %v4723_v5 = vsub.f32 %v155_v1, %v155_v1  ;;  %v334_v7 = vsub.f32 %v156_v3, %v156_v3  ;;  %3773 = vmatpush3.bf16.msra.mxu0 %v4436_v12  ;;  %vm109_vm5 = vcmask 261120   ;;  %v85_v17 = vld [vmem:[%s5431_s0] sm:$0xf]  ;;  %v4602_v41 = vmov 0   ;;  %s4604_s0 = smov 1   ;;  %s4605_s1 = smov [#allocation10]  }
  0x4d   :  { %vm4725_vm4 = vmpackc.low %vm154_vm0, %vm154_vm0  ;;  %3841 = vmatprep.subr.msk.bf16.mxu1 %vm4719_vm3, %v4601_v8  ;;  %3774 = vmatprep.subr.bf16.mxu0 %v4598_v0  ;;  %v2643_v21 = vld [vmem:[#allocation7] ss:$0 sm:$0xff]  ;;  %v4603_v2 = vmov 1   ;;  %s2630_s15 = sshll.u32 %s4605_s1, 4  ;;  %s2631_s15 = int_to_ptr.vmem [resolvable:$true] %s2630_s15 }
  0x4e   :  { %v4733_v9 = vand.u32 4294901760, %v4723_v5  ;;  %3843 = vmatpush3.bf16.msk.msra.mxu1 %vm4725_vm4, %v4601_v8  ;;  %v4738_v10 = vand.u32 4294901760, %v334_v7  ;;  %v4818_v20 = vpack.c.bf16 %v334_v7, %v334_v7  ;;  %v4842_v37 = vpack.c.bf16 %v4723_v5, %v4723_v5  ;;  %4432 = vset.pattern.permute.xlu0 %v4602_v41  ;;  %v4442_v12 = vld [vmem:[#allocation2 + $0x20] sm:$0xff]   ;;  %s4560_s16 = scalar_lea.vmem %s2631_s15, 128  ;;  %p4565_p5 = scmp.lt.s32.totalorder %s2631_s15, %s2631_s15 }
  0x4f   :  { %3845 = vmatprep.subr.msk.bf16.mxu1 %vm4719_vm3, %v4601_v8  ;;  %4433 = vset.pattern.permute.xlu1 %v4603_v2  ;;  %p4561_p4 = scmp.ne.s32.totalorder %s2631_s15, %s4560_s16  ;;  %p4566_p6 = scmp.lt.s32.totalorder %s4560_s16, %s4560_s16 }
  0x50   :  { %v240_v11 = vsub.f32 %v4723_v5, %v4733_v9  ;;  %v336_v13 = vsub.f32 %v334_v7, %v4738_v10  ;;  %3775 = vmatpush3.bf16.msra.mxu0 %v4437_v14  ;;  %v4902_v39 = vpack.c.bf16 %v4738_v10, %v4738_v10  ;;  %v4913_v40 = vpack.c.bf16 %v4733_v9, %v4733_v9  ;;  %v4438_v7 = vld [vmem:[#allocation2] sm:$0xff]   ;;  %v4439_v9 = vld [vmem:[#allocation2 + $0x8] sm:$0xff]   ;;  %v4440_v10 = vld [vmem:[#allocation2 + $0x10] sm:$0xff]  }
  0x51   :  { %p4567_p7 = por %p4566_p6, %p4565_p5 }
  0x52   :  { %3847 = vmatpush3.bf16.msk.msra.mxu1 %vm4725_vm4, %v4601_v8  ;;  %v337_v15 = vand.u32 4294901760, %v336_v13  ;;  %v241_v16 = vand.u32 4294901760, %v240_v11  ;;  %v4441_v11 = vld [vmem:[#allocation2 + $0x18] sm:$0xff]  }
  0x53   :  { %3849 = vmatprep.subr.msk.bf16.mxu1 %vm4719_vm3, %v4601_v8  ;;  %3777 = vmatmul.mubr.msk.bf16.vlgmr.msra.gmra.mrb[0].mxu0 %vm109_vm5, %v85_v17  ;;  %p4568_p8 = pnand %p4567_p7, %p4561_p4 }
  0x54   :  { %v4762_v18 = vpack.c.bf16 %v337_v15, %v337_v15  ;;  %v4767_v19 = vpack.c.bf16 %v241_v16, %v241_v16 }
  0x56   :  { %3851 = vmatpush3.bf16.msk.msra.mxu1 %vm4725_vm4, %v4601_v8  ;;  %3873 = vmatprep.subr.bf16.mxu0 %v4762_v18 }
  0x57   :  { %3853 = vmatprep.subr.msk.bf16.mxu1 %vm4719_vm3, %v4601_v8  ;;  %3875 = vmatpush3.bf16.msra.mxu0 %v4767_v19 }
  0x58   :  { %3877 = vmatprep.subr.bf16.mxu0 %v4762_v18 }
  0x5a   :  { %3855 = vmatpush3.bf16.msk.msra.mxu1 %vm4725_vm4, %v4601_v8 }
  0x5b   :  { %3857 = vmatprep.subr.msk.bf16.mxu1 %vm4719_vm3, %v4601_v8  ;;  %3879 = vmatpush3.bf16.msra.mxu0 %v4767_v19 }
  0x5c   :  { %3881 = vmatprep.subr.bf16.mxu0 %v4762_v18 }
  0x5e   :  { %3859 = vmatpush3.bf16.msk.msra.mxu1 %vm4725_vm4, %v4601_v8 }
  0x5f   :  { %3861 = vmatprep.subr.msk.bf16.mxu1 %vm4719_vm3, %v4601_v8  ;;  %3883 = vmatpush3.bf16.msra.mxu0 %v4767_v19 }
  0x60   :  { %3885 = vmatprep.subr.bf16.mxu0 %v4762_v18 }
  0x62   :  { %3863 = vmatpush3.bf16.msk.msra.mxu1 %vm4725_vm4, %v4601_v8 }
  0x63   :  { %3865 = vmatprep.subr.msk.bf16.mxu1 %vm4719_vm3, %v4601_v8  ;;  %3887 = vmatpush3.bf16.msra.mxu0 %v4767_v19 }
  0x64   :  { %3889 = vmatprep.subr.bf16.mxu0 %v4762_v18 }
  0x66   :  { %3867 = vmatpush3.bf16.msk.msra.mxu1 %vm4725_vm4, %v4601_v8 }
  0x67   :  { %3869 = vmatprep.subr.msk.bf16.mxu1 %vm4719_vm3, %v4601_v8  ;;  %3891 = vmatpush3.bf16.msra.mxu0 %v4767_v19 }
  0x68   :  { %3893 = vmatprep.subr.bf16.mxu0 %v4762_v18 }
  0x6a   :  { %3871 = vmatpush3.bf16.msk.msra.mxu1 %vm4725_vm4, %v4601_v8 }
  0x6b   :  { %3895 = vmatpush3.bf16.msra.mxu0 %v4767_v19  ;;  %3905 = vmatprep.subr.bf16.mxu1 %v4818_v20 }
  0x6c   :  { %3897 = vmatprep.subr.bf16.mxu0 %v4762_v18 }
  0x6f   :  { %3899 = vmatpush3.bf16.msra.mxu0 %v4767_v19 }
  0x70   :  { %3901 = vmatprep.subr.bf16.mxu0 %v4762_v18 }
  0x73   :  { %3903 = vmatpush3.bf16.msra.mxu0 %v4767_v19 }
  0x74   :  { %3937 = vmatprep.subr.msk.bf16.mxu0 %vm4719_vm3, %v4601_v8 }
 0x126   :  { %v147_v22 = vpop.f32.mrb[0].mxu0 }
 0x127   :  { %v4821_v23 = vadd.f32 %v2643_v21, %v147_v22  ;;  %v3778_v24 = vpop.f32.mrb[1].mxu0  ;;  %v4443_v21 = vld [vmem:[#allocation2 + $0x28] sm:$0xff]   ;;  %v4444_v22 = vld [vmem:[#allocation2 + $0x30] sm:$0xff]  }
 0x128   :  { %v150_v25 = vpop.f32.mrb[2].mxu0  ;;  %v4445_v24 = vld [vmem:[#allocation2 + $0x38] sm:$0xff]  }
 0x129   :  { %v153_v26 = vmul.f32 %v4821_v23, %v4821_v23  ;;  %v3779_v27 = vpop.f32.mrb[3].mxu0  ;;  %v4826_v28 = vand.u32 4294901760, %v4821_v23 }
 0x12a   :  { %v2791_v27 = vld [vmem:[#allocation7 + $0x1] ss:$0 sm:$0xff] }
 0x12b   :  { %v221_v29 = vand.u32 4294901760, %v153_v26  ;;  %v228_v30 = vsub.f32 %v4821_v23, %v4826_v28 }
 0x12d   :  { %430 = vmatprep.mubr.f32.mxu0 %v221_v29  ;;  %v222_v31 = vsub.f32 %v153_v26, %v221_v29  ;;  %v229_v32 = vand.u32 4294901760, %v228_v30 }
 0x12e   :  { %432 = vmatmul.mubr.f32.vlgmr.msra.gmra.mrb[4].mxu0 %v4826_v28 }
 0x12f   :  { %3939 = vmatpush3.bf16.msk.msra.mxu0 %vm4725_vm4, %v4601_v8  ;;  %v223_v33 = vand.u32 4294901760, %v222_v31  ;;  %v230_v34 = vsub.f32 %v228_v30, %v229_v32 }
 0x130   :  { %3941 = vmatprep.subr.msk.bf16.mxu0 %vm4719_vm3, %v4601_v8 }
 0x131   :  { %610 = vmatprep.mubr.f32.mxu0 %v223_v33  ;;  %v224_v35 = vsub.f32 %v222_v31, %v223_v33  ;;  %v231_v38 = vand.u32 4294901760, %v230_v34 }
 0x133   :  { %3943 = vmatpush3.bf16.msk.msra.mxu0 %vm4725_vm4, %v4601_v8  ;;  %v225_v36 = vand.u32 4294901760, %v224_v35 }
 0x134   :  { %3945 = vmatprep.subr.msk.bf16.mxu0 %vm4719_vm3, %v4601_v8 }
 0x135   :  { %226 = vmatprep.mubr.f32.mxu1 %v225_v36 }
 0x136   :  { %232 = vmatmul.mubr.f32.vlgmr.msra.gmra.mrb[0].mxu1 %v231_v38 }
 0x137   :  { %3907 = vmatpush3.bf16.msra.mxu1 %v4842_v37  ;;  %3947 = vmatpush3.bf16.msk.msra.mxu0 %vm4725_vm4, %v4601_v8 }
 0x138   :  { %535 = vmatprep.mubr.f32.mxu1 %v222_v31  ;;  %3909 = vmatprep.subr.bf16.mxu1 %v4818_v20 }
 0x139   :  { %3949 = vmatprep.subr.msk.bf16.mxu0 %vm4719_vm3, %v4601_v8 }
 0x13b   :  { %3911 = vmatpush3.bf16.msra.mxu1 %v4842_v37  ;;  %3951 = vmatpush3.bf16.msk.msra.mxu0 %vm4725_vm4, %v4601_v8 }
 0x13c   :  { %3913 = vmatprep.subr.bf16.mxu1 %v4818_v20  ;;  %3953 = vmatprep.subr.msk.bf16.mxu0 %vm4719_vm3, %v4601_v8 }
 0x13f   :  { %3915 = vmatpush3.bf16.msra.mxu1 %v4842_v37  ;;  %3955 = vmatpush3.bf16.msk.msra.mxu0 %vm4725_vm4, %v4601_v8 }
 0x140   :  { %3917 = vmatprep.subr.bf16.mxu1 %v4818_v20  ;;  %3957 = vmatprep.subr.msk.bf16.mxu0 %vm4719_vm3, %v4601_v8 }
 0x143   :  { %3919 = vmatpush3.bf16.msra.mxu1 %v4842_v37  ;;  %3959 = vmatpush3.bf16.msk.msra.mxu0 %vm4725_vm4, %v4601_v8 }
 0x144   :  { %3921 = vmatprep.subr.bf16.mxu1 %v4818_v20  ;;  %3961 = vmatprep.subr.msk.bf16.mxu0 %vm4719_vm3, %v4601_v8 }
 0x147   :  { %3923 = vmatpush3.bf16.msra.mxu1 %v4842_v37  ;;  %3963 = vmatpush3.bf16.msk.msra.mxu0 %vm4725_vm4, %v4601_v8 }
 0x148   :  { %3925 = vmatprep.subr.bf16.mxu1 %v4818_v20  ;;  %3965 = vmatprep.subr.msk.bf16.mxu0 %vm4719_vm3, %v4601_v8 }
 0x14b   :  { %3927 = vmatpush3.bf16.msra.mxu1 %v4842_v37  ;;  %3967 = vmatpush3.bf16.msk.msra.mxu0 %vm4725_vm4, %v4601_v8 }
 0x14c   :  { %3929 = vmatprep.subr.bf16.mxu1 %v4818_v20  ;;  %4001 = vmatprep.subr.msk.bf16.mxu0 %vm4719_vm3, %v4601_v8 }
 0x14e   :  { %614 = vmatmul.mubr.f32.vlgmr.msra.gmra.mrb[6].mxu0 %v229_v32 }
 0x14f   :  { %3931 = vmatpush3.bf16.msra.mxu1 %v4842_v37  ;;  %4003 = vmatpush3.bf16.msk.msra.mxu0 %vm4725_vm4, %v4601_v8 }
 0x150   :  { %820 = vmatprep.mubr.f32.mxu0 %v221_v29  ;;  %3933 = vmatprep.subr.bf16.mxu1 %v4818_v20 }
 0x151   :  { %4005 = vmatprep.subr.msk.bf16.mxu0 %vm4719_vm3, %v4601_v8 }
 0x153   :  { %3935 = vmatpush3.bf16.msra.mxu1 %v4842_v37  ;;  %4007 = vmatpush3.bf16.msk.msra.mxu0 %vm4725_vm4, %v4601_v8 }
 0x154   :  { %3969 = vmatprep.subr.bf16.mxu1 %v4902_v39  ;;  %4009 = vmatprep.subr.msk.bf16.mxu0 %vm4719_vm3, %v4601_v8 }
 0x156   :  { %538 = vmatmul.mubr.f32.vlgmr.msra.gmra.mrb[2].mxu1 %v228_v30  ;;  %v2792_v30 = vld [vmem:[#allocation7 + $0x2] ss:$0 sm:$0xff] }
 0x157   :  { %3971 = vmatpush3.bf16.msra.mxu1 %v4913_v40  ;;  %748 = vmatprep.mubr.f32.mxu1 %v221_v29 }
 0x158   :  { %4011 = vmatpush3.bf16.msk.msra.mxu0 %vm4725_vm4, %v4601_v8  ;;  %3973 = vmatprep.subr.bf16.mxu1 %v4902_v39 }
 0x159   :  { %4013 = vmatprep.subr.msk.bf16.mxu0 %vm4719_vm3, %v4601_v8 }
 0x15b   :  { %3975 = vmatpush3.bf16.msra.mxu1 %v4913_v40 }
 0x15c   :  { %4015 = vmatpush3.bf16.msk.msra.mxu0 %vm4725_vm4, %v4601_v8  ;;  %3977 = vmatprep.subr.bf16.mxu1 %v4902_v39 }
 0x15d   :  { %4017 = vmatprep.subr.msk.bf16.mxu0 %vm4719_vm3, %v4601_v8 }
 0x15f   :  { %3979 = vmatpush3.bf16.msra.mxu1 %v4913_v40 }
 0x160   :  { %4019 = vmatpush3.bf16.msk.msra.mxu0 %vm4725_vm4, %v4601_v8  ;;  %3981 = vmatprep.subr.bf16.mxu1 %v4902_v39 }
 0x161   :  { %4021 = vmatprep.subr.msk.bf16.mxu0 %vm4719_vm3, %v4601_v8 }
 0x163   :  { %3983 = vmatpush3.bf16.msra.mxu1 %v4913_v40 }
 0x164   :  { %4023 = vmatpush3.bf16.msk.msra.mxu0 %vm4725_vm4, %v4601_v8  ;;  %3985 = vmatprep.subr.bf16.mxu1 %v4902_v39 }
 0x165   :  { %4025 = vmatprep.subr.msk.bf16.mxu0 %vm4719_vm3, %v4601_v8 }
 0x167   :  { %3987 = vmatpush3.bf16.msra.mxu1 %v4913_v40 }
 0x168   :  { %4027 = vmatpush3.bf16.msk.msra.mxu0 %vm4725_vm4, %v4601_v8  ;;  %3989 = vmatprep.subr.bf16.mxu1 %v4902_v39 }
 0x169   :  { %4029 = vmatprep.subr.msk.bf16.mxu0 %vm4719_vm3, %v4601_v8 }
 0x16b   :  { %3991 = vmatpush3.bf16.msra.mxu1 %v4913_v40 }
 0x16c   :  { %4031 = vmatpush3.bf16.msk.msra.mxu0 %vm4725_vm4, %v4601_v8  ;;  %3993 = vmatprep.subr.bf16.mxu1 %v4902_v39 }
 0x16d   :  { %4033 = vmatprep.subr.msk.bf16.mxu0 %vm4719_vm3, %v4601_v8 }
 0x16f   :  { %822 = vmatmul.mubr.f32.vlgmr.msra.gmra.mrb[8].mxu0 %v4826_v28  ;;  %3995 = vmatpush3.bf16.msra.mxu1 %v4913_v40 }
 0x170   :  { %3997 = vmatprep.subr.bf16.mxu1 %v4902_v39  ;;  %4035 = vmatpush3.bf16.msk.msra.mxu0 %vm4725_vm4, %v4601_v8 }
 0x171   :  { %4037 = vmatprep.subr.msk.bf16.mxu0 %vm4719_vm3, %v4601_v8 }
 0x173   :  { %3999 = vmatpush3.bf16.msra.mxu1 %v4913_v40 }
 0x174   :  { %3780 = vmatprep.subr.bf16.mxu1 %v4598_v0  ;;  %4039 = vmatpush3.bf16.msk.msra.mxu0 %vm4725_vm4, %v4601_v8 }
 0x175   :  { %4041 = vmatprep.subr.msk.bf16.mxu0 %vm4719_vm3, %v4601_v8 }
 0x176   :  { %750 = vmatmul.mubr.f32.vlgmr.msra.gmra.mrb[4].mxu1 %v4826_v28 }
 0x177   :  { %3796 = vmatprep.mubr.msk.bf16.mxu1 %vm4599_vm1, %v4598_v0  ;;  %3781 = vmatpush3.bf16.msra.mxu1 %v4438_v7 }
 0x178   :  { %4043 = vmatpush3.bf16.msk.msra.mxu0 %vm4725_vm4, %v4601_v8  ;;  %3782 = vmatprep.subr.bf16.mxu1 %v4598_v0 }
 0x179   :  { %4045 = vmatprep.subr.msk.bf16.mxu0 %vm4719_vm3, %v4601_v8 }
 0x17b   :  { %3783 = vmatpush3.bf16.msra.mxu1 %v4439_v9 }
 0x17c   :  { %4047 = vmatpush3.bf16.msk.msra.mxu0 %vm4725_vm4, %v4601_v8  ;;  %3784 = vmatprep.subr.bf16.mxu1 %v4598_v0 }
 0x17d   :  { %4049 = vmatprep.subr.msk.bf16.mxu0 %vm4719_vm3, %v4601_v8 }
 0x17f   :  { %3785 = vmatpush3.bf16.msra.mxu1 %v4440_v10 }
 0x180   :  { %4051 = vmatpush3.bf16.msk.msra.mxu0 %vm4725_vm4, %v4601_v8  ;;  %3786 = vmatprep.subr.bf16.mxu1 %v4598_v0 }
 0x181   :  { %4053 = vmatprep.subr.msk.bf16.mxu0 %vm4719_vm3, %v4601_v8 }
 0x183   :  { %3787 = vmatpush3.bf16.msra.mxu1 %v4441_v11 }
 0x184   :  { %4055 = vmatpush3.bf16.msk.msra.mxu0 %vm4725_vm4, %v4601_v8  ;;  %3788 = vmatprep.subr.bf16.mxu1 %v4598_v0 }
 0x185   :  { %4057 = vmatprep.subr.msk.bf16.mxu0 %vm4719_vm3, %v4601_v8 }
 0x187   :  { %3789 = vmatpush3.bf16.msra.mxu1 %v4442_v12 }
 0x188   :  { %4059 = vmatpush3.bf16.msk.msra.mxu0 %vm4725_vm4, %v4601_v8  ;;  %3790 = vmatprep.subr.bf16.mxu1 %v4598_v0 }
 0x189   :  { %4061 = vmatprep.subr.msk.bf16.mxu0 %vm4719_vm3, %v4601_v8 }
 0x18b   :  { %3791 = vmatpush3.bf16.msra.mxu1 %v4443_v21 }
 0x18c   :  { %4063 = vmatpush3.bf16.msk.msra.mxu0 %vm4725_vm4, %v4601_v8  ;;  %3792 = vmatprep.subr.bf16.mxu1 %v4598_v0 }
 0x18d   :  { %4097 = vmatprep.subr.bf16.mxu0 %v4818_v20 }
 0x18f   :  { %3793 = vmatpush3.bf16.msra.mxu1 %v4444_v22 }
 0x190   :  { %3794 = vmatprep.subr.bf16.mxu1 %v4598_v0 }
 0x193   :  { %3795 = vmatpush3.bf16.msra.mxu1 %v4445_v24  ;;  %v4446_v24 = vld [vmem:[#allocation5] sm:$0xff]  }
 0x194   :  { %4065 = vmatprep.subr.bf16.mxu1 %v4762_v18 }
 0x201   :  { %v3182_v42 = vpop.f32.mrb[4].mxu0 }
 0x202   :  { %v3183_v43 = vpop.f32.mrb[5].mxu0 }
 0x203   :  { %v3184_v44 = vadd.f32 %v3183_v43, %v3182_v42 }
 0x209   :  { %v3147_v45 = vpop.f32.mrb[0].mxu1 }
 0x20a   :  { %v3148_v46 = vpop.f32.mrb[1].mxu1 }
 0x20b   :  { %v3149_v47 = vadd.f32 %v3148_v46, %v3147_v45 }
 0x20d   :  { %v434_v48 = vadd.f32 %v3184_v44, %v3149_v47 }
 0x221   :  { %v3252_v49 = vpop.f32.mrb[6].mxu0 }
 0x222   :  { %v3253_v50 = vpop.f32.mrb[7].mxu0 }
 0x223   :  { %v3254_v51 = vadd.f32 %v3253_v50, %v3252_v49 }
 0x229   :  { %v3217_v52 = vpop.f32.mrb[2].mxu1 }
 0x22a   :  { %v3218_v53 = vpop.f32.mrb[3].mxu1 }
 0x22b   :  { %v3219_v54 = vadd.f32 %v3218_v53, %v3217_v52 }
 0x22d   :  { %v540_v55 = vadd.f32 %v3219_v54, %v434_v48 }
 0x22f   :  { %v616_v56 = vadd.f32 %v3254_v51, %v540_v55 }
 0x242   :  { %v3322_v57 = vpop.f32.mrb[8].mxu0 }
 0x243   :  { %v3323_v58 = vpop.f32.mrb[9].mxu0 }
 0x244   :  { %v3324_v59 = vadd.f32 %v3323_v58, %v3322_v57 }
 0x249   :  { %v3287_v60 = vpop.f32.mrb[4].mxu1 }
 0x24a   :  { %v3288_v61 = vpop.f32.mrb[5].mxu1 }
 0x24b   :  { %v3289_v62 = vadd.f32 %v3288_v61, %v3287_v60 }
 0x24d   :  { %v752_v63 = vadd.f32 %v3289_v62, %v616_v56 }
 0x24f   :  { %v824_v1 = vadd.f32 %v3324_v59, %v752_v63 }
 0x251   :  { %v827_v3 = vmul.f32 0.0078125, %v824_v1 }
 0x253   :  { %v828_v5 = vmul.f32 %v827_v3, %v827_v3 }
 0x255   :  { %830 = vrot.lane.b32.xlu0 %v828_v5, %s4604_s0 }
 0x259   :  { %837 = vperm.xlu0 %4432, %v827_v3  }
 0x25d   :  { %4435 = vset.pattern.permute.xlu0 %v4603_v2 }
 0x2c7   :  { %v831_v13 = vpop.permute.xlu0 %830 }
 0x2c8   :  { %v833_v14 = vsub.f32 %v827_v3, %v831_v13 }
 0x2ca   :  { %v834_v15 = vmax.f32 %v833_v14, 0.0 }
 0x2cc   :  { %v841_v16 = vadd.f32 1e-05, %v834_v15 }
 0x2ce   :  { %4462 = vrsqrt.f32 %v841_v16 }
 0x2d8   :  { %v4463_v17 = vpop.eup %4462  ;;  %v838_v25 = vpop.permute.xlu0 %837 }
 0x2d9   :  { %845 = vperm.xlu1 %4433, %v4463_v17   ;;  %v840_v26 = vsub.f32 %v4821_v23, %v838_v25  ;;  %v2793_v23 = vld [vmem:[#allocation7 + $0x3] ss:$0 sm:$0xff]  ;;  %v4447_v25 = vld [vmem:[#allocation5 + $0x8] sm:$0xff]  }
 0x2dd   :  { %4434 = vset.pattern.permute.xlu1 %v4602_v41 }
 0x358   :  { %v846_v28 = vpop.permute.xlu1 %845 }
 0x359   :  { %v848_v29 = vmul.f32 %v846_v28, %v840_v26  ;;  %v4448_v26 = vld [vmem:[#allocation5 + $0x10] sm:$0xff]   ;;  %v4450_v28 = vld [vmem:[#allocation5 + $0x20] sm:$0xff]  }
 0x35b   :  { %v853_v31 = vmul.f32 %v2791_v27, %v848_v29  ;;  %v4449_v27 = vld [vmem:[#allocation5 + $0x18] sm:$0xff]  }
 0x35d   :  { %v858_v32 = vadd.f32 %v2792_v30, %v853_v31 }
 0x35f   :  { %v859_v33 = vmul.f32 0.1, %v858_v32 }
 0x361   :  { %v860_v34 = vmax.f32 %v858_v32, %v859_v33 }
 0x363   :  { %v861_v35 = vpack.c.bf16 %v860_v34, %v860_v34  ;;  %v4451_v34 = vld [vmem:[#allocation5 + $0x28] sm:$0xff]  }
 0x365   :  { %3797 = vmatmul.mubr.bf16.vlgmr.msra.gmra.mrb[8].mxu1 %v861_v35  ;;  %v4452_v35 = vld [vmem:[#allocation5 + $0x30] sm:$0xff]  }
 0x366   :  { %4067 = vmatpush3.bf16.msra.mxu1 %v4767_v19 }
 0x367   :  { %4069 = vmatprep.subr.bf16.mxu1 %v4762_v18 }
 0x36a   :  { %4071 = vmatpush3.bf16.msra.mxu1 %v4767_v19 }
 0x36b   :  { %4073 = vmatprep.subr.bf16.mxu1 %v4762_v18 }
 0x36e   :  { %4075 = vmatpush3.bf16.msra.mxu1 %v4767_v19 }
 0x36f   :  { %4077 = vmatprep.subr.bf16.mxu1 %v4762_v18 }
 0x372   :  { %4079 = vmatpush3.bf16.msra.mxu1 %v4767_v19 }
 0x373   :  { %4081 = vmatprep.subr.bf16.mxu1 %v4762_v18 }
 0x376   :  { %4083 = vmatpush3.bf16.msra.mxu1 %v4767_v19 }
 0x377   :  { %4085 = vmatprep.subr.bf16.mxu1 %v4762_v18 }
 0x37a   :  { %4087 = vmatpush3.bf16.msra.mxu1 %v4767_v19 }
 0x37b   :  { %4089 = vmatprep.subr.bf16.mxu1 %v4762_v18 }
 0x37e   :  { %4091 = vmatpush3.bf16.msra.mxu1 %v4767_v19 }
 0x37f   :  { %4093 = vmatprep.subr.bf16.mxu1 %v4762_v18 }
 0x382   :  { %4095 = vmatpush3.bf16.msra.mxu1 %v4767_v19 }
 0x383   :  { %4129 = vmatprep.subr.msk.bf16.mxu1 %vm4719_vm3, %v4601_v8 }
 0x438   :  { %v967_v36 = vpop.f32.mrb[8].mxu1 }
 0x439   :  { %v5049_v38 = vadd.f32 %v2793_v23, %v967_v36  ;;  %v3798_v41 = vpop.f32.mrb[9].mxu1  ;;  %v4453_v23 = vld [vmem:[#allocation5 + $0x38] sm:$0xff]  }
 0x43a   :  { %v970_v42 = vpop.f32.mrb[10].mxu1 }
 0x43b   :  { %v973_v43 = vmul.f32 %v5049_v38, %v5049_v38  ;;  %v3799_v44 = vpop.f32.mrb[11].mxu1  ;;  %v5054_v45 = vand.u32 4294901760, %v5049_v38  ;;  %v2946_v42 = vld [vmem:[#allocation7 + $0x4] ss:$0 sm:$0xff] }
 0x43d   :  { %v1038_v46 = vand.u32 4294901760, %v973_v43  ;;  %v1045_v47 = vsub.f32 %v5049_v38, %v5054_v45 }
 0x43f   :  { %1247 = vmatprep.mubr.f32.mxu1 %v1038_v46  ;;  %v1039_v48 = vsub.f32 %v973_v43, %v1038_v46  ;;  %v1046_v49 = vand.u32 4294901760, %v1045_v47 }
 0x440   :  { %1249 = vmatmul.mubr.f32.vlgmr.msra.gmra.mrb[6].mxu1 %v5054_v45 }
 0x441   :  { %4131 = vmatpush3.bf16.msk.msra.mxu1 %vm4725_vm4, %v4601_v8  ;;  %v1040_v50 = vand.u32 4294901760, %v1039_v48  ;;  %v1047_v51 = vsub.f32 %v1045_v47, %v1046_v49 }
 0x442   :  { %4133 = vmatprep.subr.msk.bf16.mxu1 %vm4719_vm3, %v4601_v8 }
 0x443   :  { %1427 = vmatprep.mubr.f32.mxu1 %v1040_v50  ;;  %v1041_v52 = vsub.f32 %v1039_v48, %v1040_v50  ;;  %v1048_v54 = vand.u32 4294901760, %v1047_v51 }
 0x445   :  { %4135 = vmatpush3.bf16.msk.msra.mxu1 %vm4725_vm4, %v4601_v8  ;;  %v1042_v53 = vand.u32 4294901760, %v1041_v52 }
 0x446   :  { %4137 = vmatprep.subr.msk.bf16.mxu1 %vm4719_vm3, %v4601_v8 }
 0x447   :  { %1043 = vmatprep.mubr.f32.mxu0 %v1042_v53 }
 0x448   :  { %1049 = vmatmul.mubr.f32.vlgmr.msra.gmra.mrb[10].mxu0 %v1048_v54 }
 0x449   :  { %4099 = vmatpush3.bf16.msra.mxu0 %v4842_v37  ;;  %4139 = vmatpush3.bf16.msk.msra.mxu1 %vm4725_vm4, %v4601_v8 }
 0x44a   :  { %1352 = vmatprep.mubr.f32.mxu0 %v1039_v48  ;;  %4101 = vmatprep.subr.bf16.mxu0 %v4818_v20 }
 0x44b   :  { %4141 = vmatprep.subr.msk.bf16.mxu1 %vm4719_vm3, %v4601_v8 }
 0x44d   :  { %4103 = vmatpush3.bf16.msra.mxu0 %v4842_v37  ;;  %4143 = vmatpush3.bf16.msk.msra.mxu1 %vm4725_vm4, %v4601_v8 }
 0x44e   :  { %4105 = vmatprep.subr.bf16.mxu0 %v4818_v20  ;;  %4145 = vmatprep.subr.msk.bf16.mxu1 %vm4719_vm3, %v4601_v8 }
 0x451   :  { %4107 = vmatpush3.bf16.msra.mxu0 %v4842_v37  ;;  %4147 = vmatpush3.bf16.msk.msra.mxu1 %vm4725_vm4, %v4601_v8 }
 0x452   :  { %4109 = vmatprep.subr.bf16.mxu0 %v4818_v20  ;;  %4149 = vmatprep.subr.msk.bf16.mxu1 %vm4719_vm3, %v4601_v8 }
 0x455   :  { %4111 = vmatpush3.bf16.msra.mxu0 %v4842_v37  ;;  %4151 = vmatpush3.bf16.msk.msra.mxu1 %vm4725_vm4, %v4601_v8 }
 0x456   :  { %4113 = vmatprep.subr.bf16.mxu0 %v4818_v20  ;;  %4153 = vmatprep.subr.msk.bf16.mxu1 %vm4719_vm3, %v4601_v8 }
 0x459   :  { %4115 = vmatpush3.bf16.msra.mxu0 %v4842_v37  ;;  %4155 = vmatpush3.bf16.msk.msra.mxu1 %vm4725_vm4, %v4601_v8 }
 0x45a   :  { %4117 = vmatprep.subr.bf16.mxu0 %v4818_v20  ;;  %4157 = vmatprep.subr.msk.bf16.mxu1 %vm4719_vm3, %v4601_v8 }
 0x45d   :  { %4119 = vmatpush3.bf16.msra.mxu0 %v4842_v37  ;;  %4159 = vmatpush3.bf16.msk.msra.mxu1 %vm4725_vm4, %v4601_v8 }
 0x45e   :  { %4121 = vmatprep.subr.bf16.mxu0 %v4818_v20  ;;  %4193 = vmatprep.subr.msk.bf16.mxu1 %vm4719_vm3, %v4601_v8 }
 0x460   :  { %1431 = vmatmul.mubr.f32.vlgmr.msra.gmra.mrb[12].mxu1 %v1046_v49 }
 0x461   :  { %4123 = vmatpush3.bf16.msra.mxu0 %v4842_v37  ;;  %4195 = vmatpush3.bf16.msk.msra.mxu1 %vm4725_vm4, %v4601_v8 }
 0x462   :  { %1637 = vmatprep.mubr.f32.mxu1 %v1038_v46  ;;  %4125 = vmatprep.subr.bf16.mxu0 %v4818_v20 }
 0x463   :  { %4197 = vmatprep.subr.msk.bf16.mxu1 %vm4719_vm3, %v4601_v8 }
 0x465   :  { %4127 = vmatpush3.bf16.msra.mxu0 %v4842_v37  ;;  %4199 = vmatpush3.bf16.msk.msra.mxu1 %vm4725_vm4, %v4601_v8 }
 0x466   :  { %4161 = vmatprep.subr.bf16.mxu0 %v4902_v39  ;;  %4201 = vmatprep.subr.msk.bf16.mxu1 %vm4719_vm3, %v4601_v8 }
 0x468   :  { %1355 = vmatmul.mubr.f32.vlgmr.msra.gmra.mrb[12].mxu0 %v1045_v47 }
 0x469   :  { %4163 = vmatpush3.bf16.msra.mxu0 %v4913_v40  ;;  %1565 = vmatprep.mubr.f32.mxu0 %v1038_v46 }
 0x46a   :  { %4203 = vmatpush3.bf16.msk.msra.mxu1 %vm4725_vm4, %v4601_v8  ;;  %4165 = vmatprep.subr.bf16.mxu0 %v4902_v39 }
 0x46b   :  { %4205 = vmatprep.subr.msk.bf16.mxu1 %vm4719_vm3, %v4601_v8 }
 0x46d   :  { %4167 = vmatpush3.bf16.msra.mxu0 %v4913_v40 }
 0x46e   :  { %4207 = vmatpush3.bf16.msk.msra.mxu1 %vm4725_vm4, %v4601_v8  ;;  %4169 = vmatprep.subr.bf16.mxu0 %v4902_v39 }
 0x46f   :  { %4209 = vmatprep.subr.msk.bf16.mxu1 %vm4719_vm3, %v4601_v8 }
 0x471   :  { %4171 = vmatpush3.bf16.msra.mxu0 %v4913_v40 }
 0x472   :  { %4211 = vmatpush3.bf16.msk.msra.mxu1 %vm4725_vm4, %v4601_v8  ;;  %4173 = vmatprep.subr.bf16.mxu0 %v4902_v39 }
 0x473   :  { %4213 = vmatprep.subr.msk.bf16.mxu1 %vm4719_vm3, %v4601_v8 }
 0x475   :  { %4175 = vmatpush3.bf16.msra.mxu0 %v4913_v40 }
 0x476   :  { %4215 = vmatpush3.bf16.msk.msra.mxu1 %vm4725_vm4, %v4601_v8  ;;  %4177 = vmatprep.subr.bf16.mxu0 %v4902_v39 }
 0x477   :  { %4217 = vmatprep.subr.msk.bf16.mxu1 %vm4719_vm3, %v4601_v8 }
 0x479   :  { %4179 = vmatpush3.bf16.msra.mxu0 %v4913_v40 }
 0x47a   :  { %4219 = vmatpush3.bf16.msk.msra.mxu1 %vm4725_vm4, %v4601_v8  ;;  %4181 = vmatprep.subr.bf16.mxu0 %v4902_v39 }
 0x47b   :  { %4221 = vmatprep.subr.msk.bf16.mxu1 %vm4719_vm3, %v4601_v8 }
 0x47d   :  { %4183 = vmatpush3.bf16.msra.mxu0 %v4913_v40 }
 0x47e   :  { %4223 = vmatpush3.bf16.msk.msra.mxu1 %vm4725_vm4, %v4601_v8  ;;  %4185 = vmatprep.subr.bf16.mxu0 %v4902_v39 }
 0x47f   :  { %4225 = vmatprep.subr.msk.bf16.mxu1 %vm4719_vm3, %v4601_v8 }
 0x481   :  { %1639 = vmatmul.mubr.f32.vlgmr.msra.gmra.mrb[14].mxu1 %v5054_v45  ;;  %4187 = vmatpush3.bf16.msra.mxu0 %v4913_v40 }
 0x482   :  { %4189 = vmatprep.subr.bf16.mxu0 %v4902_v39  ;;  %4227 = vmatpush3.bf16.msk.msra.mxu1 %vm4725_vm4, %v4601_v8 }
 0x483   :  { %4229 = vmatprep.subr.msk.bf16.mxu1 %vm4719_vm3, %v4601_v8 }
 0x485   :  { %4191 = vmatpush3.bf16.msra.mxu0 %v4913_v40 }
 0x486   :  { %3800 = vmatprep.subr.bf16.mxu0 %v4598_v0  ;;  %4231 = vmatpush3.bf16.msk.msra.mxu1 %vm4725_vm4, %v4601_v8 }
 0x487   :  { %4233 = vmatprep.subr.msk.bf16.mxu1 %vm4719_vm3, %v4601_v8 }
 0x488   :  { %1567 = vmatmul.mubr.f32.vlgmr.msra.gmra.mrb[14].mxu0 %v5054_v45  ;;  %v2947_v45 = vld [vmem:[#allocation7 + $0x5] ss:$0 sm:$0xff] }
 0x489   :  { %3816 = vmatprep.mubr.msk.bf16.mxu0 %vm4599_vm1, %v4598_v0  ;;  %3801 = vmatpush3.bf16.msra.mxu0 %v4446_v24 }
 0x48a   :  { %4235 = vmatpush3.bf16.msk.msra.mxu1 %vm4725_vm4, %v4601_v8  ;;  %3802 = vmatprep.subr.bf16.mxu0 %v4598_v0 }
 0x48b   :  { %4237 = vmatprep.subr.msk.bf16.mxu1 %vm4719_vm3, %v4601_v8 }
 0x48d   :  { %3803 = vmatpush3.bf16.msra.mxu0 %v4447_v25 }
 0x48e   :  { %4239 = vmatpush3.bf16.msk.msra.mxu1 %vm4725_vm4, %v4601_v8  ;;  %3804 = vmatprep.subr.bf16.mxu0 %v4598_v0 }
 0x48f   :  { %4241 = vmatprep.subr.msk.bf16.mxu1 %vm4719_vm3, %v4601_v8 }
 0x491   :  { %3805 = vmatpush3.bf16.msra.mxu0 %v4448_v26 }
 0x492   :  { %4243 = vmatpush3.bf16.msk.msra.mxu1 %vm4725_vm4, %v4601_v8  ;;  %3806 = vmatprep.subr.bf16.mxu0 %v4598_v0 }
 0x493   :  { %4245 = vmatprep.subr.msk.bf16.mxu1 %vm4719_vm3, %v4601_v8 }
 0x495   :  { %3807 = vmatpush3.bf16.msra.mxu0 %v4449_v27  ;;  %v4454_v27 = vld [vmem:[#allocation8] sm:$0xff]  }
 0x496   :  { %4247 = vmatpush3.bf16.msk.msra.mxu1 %vm4725_vm4, %v4601_v8  ;;  %3808 = vmatprep.subr.bf16.mxu0 %v4598_v0 }
 0x497   :  { %4249 = vmatprep.subr.msk.bf16.mxu1 %vm4719_vm3, %v4601_v8 }
 0x499   :  { %3809 = vmatpush3.bf16.msra.mxu0 %v4450_v28  ;;  %v4455_v28 = vld [vmem:[#allocation8 + $0x8] sm:$0xff]  }
 0x49a   :  { %4251 = vmatpush3.bf16.msk.msra.mxu1 %vm4725_vm4, %v4601_v8  ;;  %3810 = vmatprep.subr.bf16.mxu0 %v4598_v0 }
 0x49b   :  { %4253 = vmatprep.subr.msk.bf16.mxu1 %vm4719_vm3, %v4601_v8 }
 0x49d   :  { %3811 = vmatpush3.bf16.msra.mxu0 %v4451_v34 }
 0x49e   :  { %4255 = vmatpush3.bf16.msk.msra.mxu1 %vm4725_vm4, %v4601_v8  ;;  %3812 = vmatprep.subr.bf16.mxu0 %v4598_v0 }
 0x49f   :  { %4289 = vmatprep.subr.bf16.mxu1 %v4818_v20 }
 0x4a1   :  { %3813 = vmatpush3.bf16.msra.mxu0 %v4452_v35 }
 0x4a2   :  { %3814 = vmatprep.subr.bf16.mxu0 %v4598_v0 }
 0x4a5   :  { %3815 = vmatpush3.bf16.msra.mxu0 %v4453_v23 }
 0x4a6   :  { %4257 = vmatprep.subr.bf16.mxu0 %v4762_v18 }
 0x513   :  { %v3401_v55 = vpop.f32.mrb[6].mxu1 }
 0x514   :  { %v3402_v56 = vpop.f32.mrb[7].mxu1 }
 0x515   :  { %v3403_v57 = vadd.f32 %v3402_v56, %v3401_v55 }
 0x51b   :  { %v3366_v58 = vpop.f32.mrb[10].mxu0 }
 0x51c   :  { %v3367_v59 = vpop.f32.mrb[11].mxu0 }
 0x51d   :  { %v3368_v60 = vadd.f32 %v3367_v59, %v3366_v58 }
 0x51f   :  { %v1251_v61 = vadd.f32 %v3403_v57, %v3368_v60 }
 0x533   :  { %v3471_v62 = vpop.f32.mrb[12].mxu1 }
 0x534   :  { %v3472_v63 = vpop.f32.mrb[13].mxu1 }
 0x535   :  { %v3473_v1 = vadd.f32 %v3472_v63, %v3471_v62 }
 0x53b   :  { %v3436_v2 = vpop.f32.mrb[12].mxu0 }
 0x53c   :  { %v3437_v3 = vpop.f32.mrb[13].mxu0 }
 0x53d   :  { %v3438_v5 = vadd.f32 %v3437_v3, %v3436_v2 }
 0x53f   :  { %v1357_v7 = vadd.f32 %v3438_v5, %v1251_v61 }
 0x541   :  { %v1433_v9 = vadd.f32 %v3473_v1, %v1357_v7 }
 0x554   :  { %v3541_v10 = vpop.f32.mrb[14].mxu1 }
 0x555   :  { %v3542_v11 = vpop.f32.mrb[15].mxu1 }
 0x556   :  { %v3543_v12 = vadd.f32 %v3542_v11, %v3541_v10 }
 0x55b   :  { %v3506_v13 = vpop.f32.mrb[14].mxu0 }
 0x55c   :  { %v3507_v14 = vpop.f32.mrb[15].mxu0 }
 0x55d   :  { %v3508_v15 = vadd.f32 %v3507_v14, %v3506_v13 }
 0x55f   :  { %v1569_v16 = vadd.f32 %v3508_v15, %v1433_v9 }
 0x561   :  { %v1641_v17 = vadd.f32 %v3543_v12, %v1569_v16 }
 0x563   :  { %v1644_v21 = vmul.f32 0.0078125, %v1641_v17 }
 0x565   :  { %v1645_v22 = vmul.f32 %v1644_v21, %v1644_v21 }
 0x567   :  { %1647 = vrot.lane.b32.xlu1 %v1645_v22, %s4604_s0 }
 0x56b   :  { %1654 = vperm.xlu1 %4434, %v1644_v21  }
 0x5d9   :  { %v1648_v29 = vpop.permute.xlu1 %1647 }
 0x5da   :  { %v1650_v30 = vsub.f32 %v1644_v21, %v1648_v29  ;;  %v4456_v29 = vld [vmem:[#allocation8 + $0x10] sm:$0xff]  }
 0x5dc   :  { %v1651_v31 = vmax.f32 %v1650_v30, 0.0  ;;  %v4457_v30 = vld [vmem:[#allocation8 + $0x18] sm:$0xff]  }
 0x5de   :  { %v1658_v32 = vadd.f32 1e-05, %v1651_v31  ;;  %v4458_v31 = vld [vmem:[#allocation8 + $0x20] sm:$0xff]  }
 0x5e0   :  { %4464 = vrsqrt.f32 %v1658_v32 }
 0x5ea   :  { %v4465_v33 = vpop.eup %4464  ;;  %v1655_v36 = vpop.permute.xlu1 %1654 }
 0x5eb   :  { %1662 = vperm.xlu0 %4435, %v4465_v33   ;;  %v1657_v41 = vsub.f32 %v5049_v38, %v1655_v36  ;;  %v2948_v38 = vld [vmem:[#allocation7 + $0x6] ss:$0 sm:$0xff]  ;;  %v4459_v36 = vld [vmem:[#allocation8 + $0x28] sm:$0xff]  }
 0x66a   :  { %v1663_v43 = vpop.permute.xlu0 %1662 }
 0x66b   :  { %v1665_v44 = vmul.f32 %v1663_v43, %v1657_v41  ;;  %v4460_v41 = vld [vmem:[#allocation8 + $0x30] sm:$0xff]  }
 0x66d   :  { %v1670_v46 = vmul.f32 %v2946_v42, %v1665_v44  ;;  %v4461_v42 = vld [vmem:[#allocation8 + $0x38] sm:$0xff]  }
 0x66f   :  { %v1675_v47 = vadd.f32 %v2947_v45, %v1670_v46  ;;  %v3101_v45 = vld [vmem:[#allocation7 + $0x7] ss:$0 sm:$0xff] }
 0x671   :  { %v1676_v48 = vmul.f32 0.1, %v1675_v47 }
 0x673   :  { %v1677_v49 = vmax.f32 %v1675_v47, %v1676_v48  ;;  %v3102_v48 = vld [vmem:[#allocation7 + $0x8] ss:$0 sm:$0xff] }
 0x675   :  { %v1678_v50 = vpack.c.bf16 %v1677_v49, %v1677_v49 }
 0x677   :  { %3817 = vmatmul.mubr.bf16.vlgmr.msra.gmra.mrb[16].mxu0 %v1678_v50 }
 0x678   :  { %4259 = vmatpush3.bf16.msra.mxu0 %v4767_v19 }
 0x679   :  { %4261 = vmatprep.subr.bf16.mxu0 %v4762_v18 }
 0x67c   :  { %4263 = vmatpush3.bf16.msra.mxu0 %v4767_v19 }
 0x67d   :  { %4265 = vmatprep.subr.bf16.mxu0 %v4762_v18 }
 0x680   :  { %4267 = vmatpush3.bf16.msra.mxu0 %v4767_v19 }
 0x681   :  { %4269 = vmatprep.subr.bf16.mxu0 %v4762_v18 }
 0x684   :  { %4271 = vmatpush3.bf16.msra.mxu0 %v4767_v19 }
 0x685   :  { %4273 = vmatprep.subr.bf16.mxu0 %v4762_v18 }
 0x688   :  { %4275 = vmatpush3.bf16.msra.mxu0 %v4767_v19 }
 0x689   :  { %4277 = vmatprep.subr.bf16.mxu0 %v4762_v18 }
 0x68c   :  { %4279 = vmatpush3.bf16.msra.mxu0 %v4767_v19 }
 0x68d   :  { %4281 = vmatprep.subr.bf16.mxu0 %v4762_v18 }
 0x690   :  { %4283 = vmatpush3.bf16.msra.mxu0 %v4767_v19 }
 0x691   :  { %4285 = vmatprep.subr.bf16.mxu0 %v4762_v18 }
 0x694   :  { %4287 = vmatpush3.bf16.msra.mxu0 %v4767_v19 }
 0x695   :  { %4321 = vmatprep.subr.msk.bf16.mxu0 %vm4719_vm3, %v4601_v8 }
 0x74a   :  { %v1784_v51 = vpop.f32.mrb[16].mxu0 }
 0x74b   :  { %v5265_v52 = vadd.f32 %v2948_v38, %v1784_v51  ;;  %v3818_v53 = vpop.f32.mrb[17].mxu0 }
 0x74c   :  { %v1787_v54 = vpop.f32.mrb[18].mxu0 }
 0x74d   :  { %v1790_v55 = vmul.f32 %v5265_v52, %v5265_v52  ;;  %v3819_v56 = vpop.f32.mrb[19].mxu0  ;;  %v5270_v57 = vand.u32 4294901760, %v5265_v52 }
 0x74f   :  { %v1855_v18 = vand.u32 4294901760, %v1790_v55  ;;  %v1862_v19 = vsub.f32 %v5265_v52, %v5270_v57 }
 0x751   :  { %2064 = vmatprep.mubr.f32.mxu0 %v1855_v18  ;;  %v1856_v58 = vsub.f32 %v1790_v55, %v1855_v18  ;;  %v1863_v59 = vand.u32 4294901760, %v1862_v19 }
 0x752   :  { %2066 = vmatmul.mubr.f32.vlgmr.msra.gmra.mrb[20].mxu0 %v5270_v57 }
 0x753   :  { %4323 = vmatpush3.bf16.msk.msra.mxu0 %vm4725_vm4, %v4601_v8  ;;  %v1857_v60 = vand.u32 4294901760, %v1856_v58  ;;  %v1864_v61 = vsub.f32 %v1862_v19, %v1863_v59 }
 0x754   :  { %4325 = vmatprep.subr.msk.bf16.mxu0 %vm4719_vm3, %v4601_v8 }
 0x755   :  { %2244 = vmatprep.mubr.f32.mxu0 %v1857_v60  ;;  %v1858_v62 = vsub.f32 %v1856_v58, %v1857_v60  ;;  %v1865_v1 = vand.u32 4294901760, %v1864_v61 }
 0x757   :  { %4327 = vmatpush3.bf16.msk.msra.mxu0 %vm4725_vm4, %v4601_v8  ;;  %v1859_v63 = vand.u32 4294901760, %v1858_v62 }
 0x758   :  { %4329 = vmatprep.subr.msk.bf16.mxu0 %vm4719_vm3, %v4601_v8 }
 0x759   :  { %1860 = vmatprep.mubr.f32.mxu1 %v1859_v63 }
 0x75a   :  { %1866 = vmatmul.mubr.f32.vlgmr.msra.gmra.mrb[16].mxu1 %v1865_v1 }
 0x75b   :  { %4291 = vmatpush3.bf16.msra.mxu1 %v4842_v37  ;;  %4331 = vmatpush3.bf16.msk.msra.mxu0 %vm4725_vm4, %v4601_v8 }
 0x75c   :  { %2169 = vmatprep.mubr.f32.mxu1 %v1856_v58  ;;  %4293 = vmatprep.subr.bf16.mxu1 %v4818_v20 }
 0x75d   :  { %4333 = vmatprep.subr.msk.bf16.mxu0 %vm4719_vm3, %v4601_v8 }
 0x75f   :  { %4295 = vmatpush3.bf16.msra.mxu1 %v4842_v37  ;;  %4335 = vmatpush3.bf16.msk.msra.mxu0 %vm4725_vm4, %v4601_v8 }
 0x760   :  { %4297 = vmatprep.subr.bf16.mxu1 %v4818_v20  ;;  %4337 = vmatprep.subr.msk.bf16.mxu0 %vm4719_vm3, %v4601_v8 }
 0x763   :  { %4299 = vmatpush3.bf16.msra.mxu1 %v4842_v37  ;;  %4339 = vmatpush3.bf16.msk.msra.mxu0 %vm4725_vm4, %v4601_v8 }
 0x764   :  { %4301 = vmatprep.subr.bf16.mxu1 %v4818_v20  ;;  %4341 = vmatprep.subr.msk.bf16.mxu0 %vm4719_vm3, %v4601_v8 }
 0x767   :  { %4303 = vmatpush3.bf16.msra.mxu1 %v4842_v37  ;;  %4343 = vmatpush3.bf16.msk.msra.mxu0 %vm4725_vm4, %v4601_v8 }
 0x768   :  { %4305 = vmatprep.subr.bf16.mxu1 %v4818_v20  ;;  %4345 = vmatprep.subr.msk.bf16.mxu0 %vm4719_vm3, %v4601_v8 }
 0x76b   :  { %4307 = vmatpush3.bf16.msra.mxu1 %v4842_v37  ;;  %4347 = vmatpush3.bf16.msk.msra.mxu0 %vm4725_vm4, %v4601_v8 }
 0x76c   :  { %4309 = vmatprep.subr.bf16.mxu1 %v4818_v20  ;;  %4349 = vmatprep.subr.msk.bf16.mxu0 %vm4719_vm3, %v4601_v8 }
 0x76f   :  { %4311 = vmatpush3.bf16.msra.mxu1 %v4842_v37  ;;  %4351 = vmatpush3.bf16.msk.msra.mxu0 %vm4725_vm4, %v4601_v8 }
 0x770   :  { %4313 = vmatprep.subr.bf16.mxu1 %v4818_v20  ;;  %4385 = vmatprep.subr.msk.bf16.mxu0 %vm4719_vm3, %v4601_v8 }
 0x772   :  { %2248 = vmatmul.mubr.f32.vlgmr.msra.gmra.mrb[22].mxu0 %v1863_v59 }
 0x773   :  { %4315 = vmatpush3.bf16.msra.mxu1 %v4842_v37  ;;  %4387 = vmatpush3.bf16.msk.msra.mxu0 %vm4725_vm4, %v4601_v8 }
 0x774   :  { %2454 = vmatprep.mubr.f32.mxu0 %v1855_v18  ;;  %4317 = vmatprep.subr.bf16.mxu1 %v4818_v20 }
 0x775   :  { %4389 = vmatprep.subr.msk.bf16.mxu0 %vm4719_vm3, %v4601_v8 }
 0x777   :  { %4319 = vmatpush3.bf16.msra.mxu1 %v4842_v37  ;;  %4391 = vmatpush3.bf16.msk.msra.mxu0 %vm4725_vm4, %v4601_v8 }
 0x778   :  { %4353 = vmatprep.subr.bf16.mxu1 %v4902_v39  ;;  %4393 = vmatprep.subr.msk.bf16.mxu0 %vm4719_vm3, %v4601_v8 }
 0x77a   :  { %2172 = vmatmul.mubr.f32.vlgmr.msra.gmra.mrb[18].mxu1 %v1862_v19 }
 0x77b   :  { %4355 = vmatpush3.bf16.msra.mxu1 %v4913_v40  ;;  %2382 = vmatprep.mubr.f32.mxu1 %v1855_v18 }
 0x77c   :  { %4395 = vmatpush3.bf16.msk.msra.mxu0 %vm4725_vm4, %v4601_v8  ;;  %4357 = vmatprep.subr.bf16.mxu1 %v4902_v39 }
 0x77d   :  { %4397 = vmatprep.subr.msk.bf16.mxu0 %vm4719_vm3, %v4601_v8 }
 0x77f   :  { %4359 = vmatpush3.bf16.msra.mxu1 %v4913_v40 }
 0x780   :  { %4399 = vmatpush3.bf16.msk.msra.mxu0 %vm4725_vm4, %v4601_v8  ;;  %4361 = vmatprep.subr.bf16.mxu1 %v4902_v39 }
 0x781   :  { %4401 = vmatprep.subr.msk.bf16.mxu0 %vm4719_vm3, %v4601_v8 }
 0x783   :  { %4363 = vmatpush3.bf16.msra.mxu1 %v4913_v40 }
 0x784   :  { %4403 = vmatpush3.bf16.msk.msra.mxu0 %vm4725_vm4, %v4601_v8  ;;  %4365 = vmatprep.subr.bf16.mxu1 %v4902_v39 }
 0x785   :  { %4405 = vmatprep.subr.msk.bf16.mxu0 %vm4719_vm3, %v4601_v8 }
 0x787   :  { %4367 = vmatpush3.bf16.msra.mxu1 %v4913_v40 }
 0x788   :  { %4407 = vmatpush3.bf16.msk.msra.mxu0 %vm4725_vm4, %v4601_v8  ;;  %4369 = vmatprep.subr.bf16.mxu1 %v4902_v39 }
 0x789   :  { %4409 = vmatprep.subr.msk.bf16.mxu0 %vm4719_vm3, %v4601_v8 }
 0x78b   :  { %4371 = vmatpush3.bf16.msra.mxu1 %v4913_v40 }
 0x78c   :  { %4411 = vmatpush3.bf16.msk.msra.mxu0 %vm4725_vm4, %v4601_v8  ;;  %4373 = vmatprep.subr.bf16.mxu1 %v4902_v39 }
 0x78d   :  { %4413 = vmatprep.subr.msk.bf16.mxu0 %vm4719_vm3, %v4601_v8 }
 0x78f   :  { %4375 = vmatpush3.bf16.msra.mxu1 %v4913_v40 }
 0x790   :  { %4415 = vmatpush3.bf16.msk.msra.mxu0 %vm4725_vm4, %v4601_v8  ;;  %4377 = vmatprep.subr.bf16.mxu1 %v4902_v39 }
 0x793   :  { %2456 = vmatmul.mubr.f32.vlgmr.msra.gmra.mrb[24].mxu0 %v5270_v57  ;;  %4379 = vmatpush3.bf16.msra.mxu1 %v4913_v40 }
 0x794   :  { %4381 = vmatprep.subr.bf16.mxu1 %v4902_v39 }
 0x797   :  { %4383 = vmatpush3.bf16.msra.mxu1 %v4913_v40 }
 0x798   :  { %3820 = vmatprep.subr.bf16.mxu1 %v4598_v0 }
 0x79a   :  { %2384 = vmatmul.mubr.f32.vlgmr.msra.gmra.mrb[20].mxu1 %v5270_v57 }
 0x79b   :  { %3836 = vmatprep.mubr.msk.bf16.mxu1 %vm4599_vm1, %v4598_v0  ;;  %3821 = vmatpush3.bf16.msra.mxu1 %v4454_v27 }
 0x79c   :  { %3822 = vmatprep.subr.bf16.mxu1 %v4598_v0 }
 0x79f   :  { %3823 = vmatpush3.bf16.msra.mxu1 %v4455_v28 }
 0x7a0   :  { %3824 = vmatprep.subr.bf16.mxu1 %v4598_v0 }
 0x7a3   :  { %3825 = vmatpush3.bf16.msra.mxu1 %v4456_v29 }
 0x7a4   :  { %3826 = vmatprep.subr.bf16.mxu1 %v4598_v0 }
 0x7a7   :  { %3827 = vmatpush3.bf16.msra.mxu1 %v4457_v30 }
 0x7a8   :  { %3828 = vmatprep.subr.bf16.mxu1 %v4598_v0 }
 0x7ab   :  { %3829 = vmatpush3.bf16.msra.mxu1 %v4458_v31 }
 0x7ac   :  { %3830 = vmatprep.subr.bf16.mxu1 %v4598_v0 }
 0x7af   :  { %3831 = vmatpush3.bf16.msra.mxu1 %v4459_v36 }
 0x7b0   :  { %3832 = vmatprep.subr.bf16.mxu1 %v4598_v0 }
 0x7b3   :  { %3833 = vmatpush3.bf16.msra.mxu1 %v4460_v41 }
 0x7b4   :  { %3834 = vmatprep.subr.bf16.mxu1 %v4598_v0 }
 0x7b7   :  { %3835 = vmatpush3.bf16.msra.mxu1 %v4461_v42 }
 0x825   :  { %v3620_v4 = vpop.f32.mrb[20].mxu0 }
 0x826   :  { %v3621_v6 = vpop.f32.mrb[21].mxu0 }
 0x827   :  { %v3622_v8 = vadd.f32 %v3621_v6, %v3620_v4 }
 0x82d   :  { %v3585_v20 = vpop.f32.mrb[16].mxu1 }
 0x82e   :  { %v3586_v37 = vpop.f32.mrb[17].mxu1 }
 0x82f   :  { %v3587_v2 = vadd.f32 %v3586_v37, %v3585_v20 }
 0x831   :  { %v2068_v3 = vadd.f32 %v3622_v8, %v3587_v2 }
 0x845   :  { %v3690_v5 = vpop.f32.mrb[22].mxu0 }
 0x846   :  { %v3691_v7 = vpop.f32.mrb[23].mxu0 }
 0x847   :  { %v3692_v9 = vadd.f32 %v3691_v7, %v3690_v5 }
 0x84d   :  { %v3655_v39 = vpop.f32.mrb[18].mxu1 }
 0x84e   :  { %v3656_v10 = vpop.f32.mrb[19].mxu1 }
 0x84f   :  { %v3657_v40 = vadd.f32 %v3656_v10, %v3655_v39 }
 0x851   :  { %v2174_v11 = vadd.f32 %v3657_v40, %v2068_v3 }
 0x853   :  { %v2250_v12 = vadd.f32 %v3692_v9, %v2174_v11 }
 0x866   :  { %v3760_v13 = vpop.f32.mrb[24].mxu0 }
 0x867   :  { %v3761_v14 = vpop.f32.mrb[25].mxu0 }
 0x868   :  { %v3762_v15 = vadd.f32 %v3761_v14, %v3760_v13 }
 0x86d   :  { %v3725_v16 = vpop.f32.mrb[20].mxu1 }
 0x86e   :  { %v3726_v17 = vpop.f32.mrb[21].mxu1 }
 0x86f   :  { %v3727_v21 = vadd.f32 %v3726_v17, %v3725_v16 }
 0x871   :  { %v2386_v22 = vadd.f32 %v3727_v21, %v2250_v12 }
 0x873   :  { %v2458_v24 = vadd.f32 %v3762_v15, %v2386_v22 }
 0x875   :  { %v2461_v25 = vmul.f32 0.0078125, %v2458_v24 }
 0x877   :  { %v2462_v26 = vmul.f32 %v2461_v25, %v2461_v25 }
 0x879   :  { %2464 = vrot.lane.b32.xlu1 %v2462_v26, %s4604_s0 }
 0x87d   :  { %2471 = vperm.xlu1 %4434, %v2461_v25  }
 0x8eb   :  { %v2465_v32 = vpop.permute.xlu1 %2464 }
 0x8ec   :  { %v2467_v33 = vsub.f32 %v2461_v25, %v2465_v32 }
 0x8ee   :  { %v2468_v34 = vmax.f32 %v2467_v33, 0.0 }
 0x8f0   :  { %v2475_v35 = vadd.f32 1e-05, %v2468_v34 }
 0x8f2   :  { %4466 = vrsqrt.f32 %v2475_v35 }
 0x8fc   :  { %v4467_v23 = vpop.eup %4466  ;;  %v2472_v43 = vpop.permute.xlu1 %2471 }
 0x8fd   :  { %2479 = vperm.xlu0 %4435, %v4467_v23   ;;  %v2474_v44 = vsub.f32 %v5265_v52, %v2472_v43 }
 0x97c   :  { %v2480_v46 = vpop.permute.xlu0 %2479 }
 0x97d   :  { %v2482_v47 = vmul.f32 %v2480_v46, %v2474_v44 }
 0x97f   :  { %v2487_v49 = vmul.f32 %v3101_v45, %v2482_v47 }
 0x981   :  { %v2492_v50 = vadd.f32 %v3102_v48, %v2487_v49 }
 0x983   :  { %v2493_v38 = vmul.f32 0.1, %v2492_v50 }
 0x985   :  { %v2494_v51 = vmax.f32 %v2492_v50, %v2493_v38 }
 0x987   :  { %2495 = vst [vmem:[#allocation10] sm:$0xff] %v2494_v51  ;;  %v2496_v53 = vpack.c.bf16 %v2494_v51, %v2494_v51 }
 0x989   :  { %3837 = vmatmul.mubr.bf16.vlgmr.msra.gmra.mrb[24].mxu1 %v2496_v53 }
 0x98a   :  { %4571 = shalt.err (!%p4568_p8)
}
 0x98b   :  { %s4572_s2 = scalar_lea.hbm %s5439_s8, 128 }
 0x98c   :  { %p4573_p9 = scmp.ne.s32.totalorder %s5439_s8, %s4572_s2  ;;  %p4576_p10 = scmp.lt.u32.totalorder %s4572_s2, %s5439_s8 }
 0x98e   :  { %p4578_p11 = pnand %p4576_p10, %p4573_p9 }
 0x990   :  { %4581 = shalt.err (!%p4578_p11)
}
 0x991   :  { %2633 = dma.vmem_to_hbm [thread:$0]  %s2631_s15, 128, %s5439_s8, [#allocation4]   ;;  %v2608_v0 = vlaneseq  ;;  %v3103_v52 = vld [vmem:[%s5437_s6] ss:$0 sm:$0xff] }
 0x993   :  { %v2609_v55 = vand.u32 127, %v2608_v0 }
 0x995   :  { %vm2610_vm6 = vcmp.lt.s32.totalorder %v2609_v55, 8 }
 0xa5c   :  { %v2602_v54 = vpop.f32.mrb[24].mxu1 }
 0xa5d   :  { %v2603_v56 = vadd.f32 %v3103_v52, %v2602_v54  ;;  %v3838_v57 = vpop.f32.mrb[25].mxu1 }
 0xa5e   :  { %v2605_v18 = vpop.f32.mrb[26].mxu1 }
 0xa5f   :  { %v2612_v19 = vmax.f32 %v2603_v56, -20.0  ;;  %v3839_v58 = vpop.f32.mrb[27].mxu1  ;;  %v2611_v59 = vsub.f32 0.0, %v2603_v56 }
 0xa61   :  { %v2613_v60 = vmin.f32 %v2612_v19, 2.0 }
 0xa63   :  { %v2614_v61 = vsel %vm2610_vm6, %v2611_v59, %v2613_v60 }
 0xa64   :  { %v2615_v62 = vmul.f32 1.442695, %v2614_v61 }
 0xa66   :  { %4468 = vpow2.f32 %v2615_v62 }
 0xa70   :  { %v4469_v63 = vpop.eup %4468 }
 0xa71   :  { %v2617_v1 = vadd.f32 1.0, %v4469_v63 }
 0xa73   :  { %4470 = vrcp.f32 %v2617_v1 }
 0xa7d   :  { %v4471_v4 = vpop.eup %4470 }
 0xa7e   :  { %v2619_v6 = vsel %vm2610_vm6, %v4471_v4, %v4469_v63 }
 0xa7f   :  { %v2620_v8 = vpack.c.bf16 %v2619_v6, %v2619_v6 }
 0xa81   :  { %2621 = vst [vmem:[%s5438_s7] sm:$0xf] %v2620_v8 }
 0xa82   :  { %4588 = dma.done.wait [#allocation4], 128  }
 0xa83   :  { %4589 = vsyncadd [#allocation4], 4294967168 }
 0xa84   :  { %2639 = vsyncpa [#allocation3], 1 }
 0xa85   :  { %2640 = vsyncpa [#allocation6], 1 }
 0xa86   :  { %2641 = vsyncpa [#allocation9], 1 }
 0xa87   :  { %2642 = vsyncpa [#allocation4], 1 }

</bundles_post_ra>
